<compile_context>
chip_gen: v5e
topology: v5e:2x2
jax: 0.10.0
libtpu: 0.0.40
codegen_flags: <defaults>
</compile_context>

<pallas_src>
import math

import jax
import jax.numpy as jnp
from jax.experimental import pallas as pl
from jax.experimental.pallas import tpu as pltpu

# ----------------------------- configuration -----------------------------
VOCAB = 128
EMBED = 32
FF = 64
HEADS = 4
LAYERS = 2
MAX_SEQ = 16
B = 2
T = 8
HD = EMBED // HEADS
M = HEADS * T          # flattened (head, token) axis, index m = h*T + t
N = B * T
EPS = 1e-5
PAD_TOKEN = 0

# Flip to jnp.bfloat16 on v6e/v7x (keep f32 accumulation via preferred_element_type).
MXU_DTYPE = jnp.float32


# ------------------------------ math helpers ------------------------------
def _layernorm(x, w, b):
    # Matches torch.nn.LayerNorm (biased variance, eps=1e-5).
    mu = jnp.mean(x, axis=-1, keepdims=True)
    var = jnp.mean((x - mu) ** 2, axis=-1, keepdims=True)
    return (x - mu) * jax.lax.rsqrt(var + EPS) * w + b


def _gelu(x):
    # exact erf GELU (torch.nn.GELU default)
    return x * 0.5 * (1.0 + jax.lax.erf(x / jnp.float32(math.sqrt(2.0))))


def _mm(a, b):
    return jnp.dot(a.astype(MXU_DTYPE), b.astype(MXU_DTYPE),
                   preferred_element_type=jnp.float32)


# ------------------------------- the kernel --------------------------------
def gpt_kernel(x0_ref, bias_ref, nonpad_ref,
               ln1w_ref, ln1b_ref, wq_ref, wk_ref, wv_ref, wo_ref, bo_ref,
               ln2w_ref, ln2b_ref, w1_ref, b1_ref, w2_ref, b2_ref,
               lnfw_ref, lnfb_ref, wh_ref, bh_ref,
               logits_ref):
    x = x0_ref[...]                     # (N, E)   activation, carried as a value
    bias = bias_ref[...]                # (B, M, M) additive attn mask, loaded once
    nonpad = nonpad_ref[...]            # (N, 1)

    def project_heads(h_in, w_ref, l):
        # per-head matmuls, head-major rows (m = h*T + t); sublane-axis concat only
        return jnp.concatenate(
            [_mm(h_in, w_ref[l, h]).reshape(B, T, HD) for h in range(HEADS)],
            axis=1)                     # (B, M, HD)

    for l in range(LAYERS):             # static unroll over layers
        # ---------------- self-attention ----------------
        h1 = _layernorm(x, ln1w_ref[l], ln1b_ref[l])          # (N, E)
        q_r = project_heads(h1, wq_ref, l)                     # scale folded into wq
        k_r = project_heads(h1, wk_ref, l)
        v_r = project_heads(h1, wv_ref, l)

        # one batched contraction + one softmax chain for all heads
        s = jnp.einsum('bqd,bkd->bqk',
                       q_r.astype(MXU_DTYPE), k_r.astype(MXU_DTYPE),
                       preferred_element_type=jnp.float32) + bias   # (B, M, M)
        mx = jnp.max(s, axis=-1, keepdims=True)
        e = jnp.exp(s - mx)
        p = e * pl.reciprocal(jnp.sum(e, axis=-1, keepdims=True), approx=True)
        o_r = jnp.einsum('bqk,bkd->bqd',
                         p.astype(MXU_DTYPE), v_r.astype(MXU_DTYPE),
                         preferred_element_type=jnp.float32)         # (B, M, HD)

        # output projection as a per-head sum: no lane-axis concat needed
        attn_proj = None
        for h in range(HEADS):
            o_h = o_r[:, h * T:(h + 1) * T, :].reshape(N, HD)
            term = _mm(o_h, wo_ref[l, h])
            attn_proj = term if attn_proj is None else attn_proj + term
        attn_proj = attn_proj + bo_ref[l]
        x = x + attn_proj * nonpad                              # residual 1 (pad rows zeroed)

        # ---------------- feed-forward ----------------
        h2 = _layernorm(x, ln2w_ref[l], ln2b_ref[l])
        ff = _gelu(_mm(h2, w1_ref[l]) + b1_ref[l])
        x = x + _mm(ff, w2_ref[l]) + b2_ref[l]                  # residual 2

    # ---------------- final LayerNorm + LM head (lane-dense V=128) ----------------
    hf = _layernorm(x, lnfw_ref[...], lnfb_ref[...])
    logits_ref[...] = _mm(hf, wh_ref[...]) + bh_ref[...]


# ------------------------- one-time weight preparation -----------------------
def prepare_params(params):
    """Hoisted out of the forward: stack per-layer weights and pre-split heads."""
    layers = params["layers"]
    scale = jnp.float32(1.0 / math.sqrt(HD))

    def stack(name):
        return jnp.stack([lp[name] for lp in layers], axis=0)

    def split_cols(w, do_scale=False):
        # (E, E) -> (H, E, HD): per-head output-column blocks
        w = w * scale if do_scale else w
        return w.reshape(EMBED, HEADS, HD).transpose(1, 0, 2)

    wq = jnp.stack([split_cols(lp["wq"], True) for lp in layers], axis=0)   # (L,H,E,HD)
    wk = jnp.stack([split_cols(lp["wk"]) for lp in layers], axis=0)
    wv = jnp.stack([split_cols(lp["wv"]) for lp in layers], axis=0)
    wo = jnp.stack([lp["wo"].reshape(HEADS, HD, EMBED) for lp in layers], axis=0)  # (L,H,HD,E)

    return {
        "te": params["te"], "pe": params["pe"],
        "ln1w": stack("ln1w"), "ln1b": stack("ln1b"),
        "wq": wq, "wk": wk, "wv": wv, "wo": wo, "bo": stack("bo"),
        "ln2w": stack("ln2w"), "ln2b": stack("ln2b"),
        "w1": stack("w1"), "b1": stack("b1"), "w2": stack("w2"), "b2": stack("b2"),
        "lnfw": params["lnfw"], "lnfb": params["lnfb"],
        "wh": params["wh"], "bh": params["bh"],
    }


# --------------------------------- forward -----------------------------------
@jax.jit
def gpt_forward(tokens, prep):
    Bsz, Tsz = tokens.shape
    pad = tokens == PAD_TOKEN                                   # (B, T) bool

    # embedding lookups are glue (plain JAX gather)
    pos = jnp.arange(Tsz)
    x = prep["te"][tokens] + prep["pe"][pos][None, :, :]
    x2d = x.reshape(Bsz * Tsz, EMBED).astype(jnp.float32)

    # additive attention bias over the head-major flattened axis m = h*T + t,
    # block-diagonal in heads, causal in tokens, key-padding masked.
    idx = jnp.arange(HEADS * Tsz)
    same_head = (idx[:, None] // Tsz) == (idx[None, :] // Tsz)
    causal = (idx[:, None] % Tsz) >= (idx[None, :] % Tsz)
    key_pad = jnp.tile(pad, (1, HEADS))                         # (B, M)
    keep = same_head[None] & causal[None] & (~key_pad)[:, None, :]
    bias = jnp.where(keep, 0.0, -1e30).astype(jnp.float32)      # (B, M, M)
    nonpad = (~pad).astype(jnp.float32).reshape(Bsz * Tsz, 1)   # (N, 1)

    args = (x2d, bias, nonpad,
            prep["ln1w"], prep["ln1b"], prep["wq"], prep["wk"], prep["wv"],
            prep["wo"], prep["bo"], prep["ln2w"], prep["ln2b"],
            prep["w1"], prep["b1"], prep["w2"], prep["b2"],
            prep["lnfw"], prep["lnfb"], prep["wh"], prep["bh"])

    vmem = pl.BlockSpec(memory_space=pltpu.MemorySpace.VMEM)
    logits2d = pl.pallas_call(
        gpt_kernel,
        out_shape=jax.ShapeDtypeStruct((Bsz * Tsz, VOCAB), jnp.float32),
        in_specs=[vmem] * len(args),
        out_specs=vmem,
    )(*args)
    return logits2d.reshape(Bsz, Tsz, VOCAB)


# -------------------------- plain-JAX reference -----------------------------
def gpt_reference(tokens, params):
    Bsz, Tsz = tokens.shape
    pad = tokens == PAD_TOKEN
    pos = jnp.arange(Tsz)
    x = params["te"][tokens] + params["pe"][pos][None, :, :]
    causal = jnp.tril(jnp.ones((Tsz, Tsz), bool))
    for lp in params["layers"]:
        h = _layernorm(x, lp["ln1w"][0], lp["ln1b"][0])
        def split(a):
            return a.reshape(Bsz, Tsz, HEADS, HD).transpose(0, 2, 1, 3)
        q, k, v = split(h @ lp["wq"]), split(h @ lp["wk"]), split(h @ lp["wv"])
        s = jnp.einsum('bhid,bhjd->bhij', q, k) / math.sqrt(HD)
        s = jnp.where(causal[None, None], s, -1e30)
        s = jnp.where(pad[:, None, None, :], -1e30, s)
        a = jax.nn.softmax(s, axis=-1)
        o = jnp.einsum('bhij,bhjd->bhid', a, v).transpose(0, 2, 1, 3)
        o = o.reshape(Bsz, Tsz, EMBED) @ lp["wo"] + lp["bo"][0]
        o = o * (1.0 - pad.astype(jnp.float32))[:, :, None]
        x = x + o
        h2 = _layernorm(x, lp["ln2w"][0], lp["ln2b"][0])
        f = _gelu(h2 @ lp["w1"] + lp["b1"][0])
        x = x + (f @ lp["w2"] + lp["b2"][0])
    x = _layernorm(x, params["lnfw"][0], params["lnfb"][0])
    return x @ params["wh"] + params["bh"][0]


# ----------------------------- parameter init ------------------------------
def init_params(key):
    def normal(k, shape):
        return (0.02 * jax.random.normal(k, shape)).astype(jnp.float32)

    keys = iter(jax.random.split(key, 16 + LAYERS * 8))
    params = {
        "te": normal(next(keys), (VOCAB, EMBED)),
        "pe": normal(next(keys), (MAX_SEQ, EMBED)),
        "lnfw": jnp.ones((1, EMBED), jnp.float32),
        "lnfb": jnp.zeros((1, EMBED), jnp.float32),
        "wh": normal(next(keys), (EMBED, VOCAB)),
        "bh": jnp.zeros((1, VOCAB), jnp.float32),
        "layers": [],
    }
    for _ in range(LAYERS):
        params["layers"].append({
            "ln1w": jnp.ones((1, EMBED), jnp.float32),
            "ln1b": jnp.zeros((1, EMBED), jnp.float32),
            "wq": normal(next(keys), (EMBED, EMBED)),
            "wk": normal(next(keys), (EMBED, EMBED)),
            "wv": normal(next(keys), (EMBED, EMBED)),
            "wo": normal(next(keys), (EMBED, EMBED)),
            "bo": jnp.zeros((1, EMBED), jnp.float32),
            "ln2w": jnp.ones((1, EMBED), jnp.float32),
            "ln2b": jnp.zeros((1, EMBED), jnp.float32),
            "w1": normal(next(keys), (EMBED, FF)),
            "b1": jnp.zeros((1, FF), jnp.float32),
            "w2": normal(next(keys), (FF, EMBED)),
            "b2": jnp.zeros((1, EMBED), jnp.float32),
        })
    return params


# --------------------------------- main -------------------------------------
if __name__ == "__main__":
    key = jax.random.PRNGKey(0)
    pkey, tkey = jax.random.split(key)
    params = init_params(pkey)
    prep = prepare_params(params)      # one-time weight prep, hoisted out of forward

    # tokens in [1, VOCAB); tail of sequence 1 is padding to exercise the mask
    tokens = jax.random.randint(tkey, (B, T), 1, VOCAB, dtype=jnp.int32)
    tokens = tokens.at[1, -2:].set(PAD_TOKEN)

    logits = gpt_forward(tokens, prep)
    logits = jax.block_until_ready(logits)

    assert logits.shape == (B, T, VOCAB)
    assert bool(jnp.all(jnp.isfinite(logits)))

    # numerical sanity check vs. plain-JAX reference (loose tol: approx recip)
    ref = gpt_reference(tokens, params)
    max_err = float(jnp.max(jnp.abs(logits - ref)))
    assert max_err < 2e-3, f"max abs err vs reference: {max_err}"

    print("KERNEL_OK")
</pallas_src>

<mosaic_0001>
module attributes {stable_mosaic.version = 11 : i64} {
  func.func @gpt_kernel(%arg0: memref<16x32xf32, #tpu.memory_space<vmem>>, %arg1: memref<2x32x32xf32, #tpu.memory_space<vmem>>, %arg2: memref<16x1xf32, #tpu.memory_space<vmem>>, %arg3: memref<2x1x32xf32, #tpu.memory_space<vmem>>, %arg4: memref<2x1x32xf32, #tpu.memory_space<vmem>>, %arg5: memref<2x4x32x8xf32, #tpu.memory_space<vmem>>, %arg6: memref<2x4x32x8xf32, #tpu.memory_space<vmem>>, %arg7: memref<2x4x32x8xf32, #tpu.memory_space<vmem>>, %arg8: memref<2x4x8x32xf32, #tpu.memory_space<vmem>>, %arg9: memref<2x1x32xf32, #tpu.memory_space<vmem>>, %arg10: memref<2x1x32xf32, #tpu.memory_space<vmem>>, %arg11: memref<2x1x32xf32, #tpu.memory_space<vmem>>, %arg12: memref<2x32x64xf32, #tpu.memory_space<vmem>>, %arg13: memref<2x1x64xf32, #tpu.memory_space<vmem>>, %arg14: memref<2x64x32xf32, #tpu.memory_space<vmem>>, %arg15: memref<2x1x32xf32, #tpu.memory_space<vmem>>, %arg16: memref<1x32xf32, #tpu.memory_space<vmem>>, %arg17: memref<1x32xf32, #tpu.memory_space<vmem>>, %arg18: memref<32x128xf32, #tpu.memory_space<vmem>>, %arg19: memref<1x128xf32, #tpu.memory_space<vmem>>, %arg20: memref<16x128xf32, #tpu.memory_space<vmem>>) attributes {dimension_semantics = [], scalar_prefetch = 0 : i64, scratch_operands = 0 : i64, tpu.core_type = #tpu.core_type<tc>} {
    %c0 = arith.constant 0 : index
    %c0_0 = arith.constant 0 : index
    %0 = vector.load %arg0[%c0, %c0_0] : memref<16x32xf32, #tpu.memory_space<vmem>>, vector<16x32xf32>
    %c0_1 = arith.constant 0 : index
    %c0_2 = arith.constant 0 : index
    %c0_3 = arith.constant 0 : index
    %1 = vector.load %arg1[%c0_1, %c0_2, %c0_3] : memref<2x32x32xf32, #tpu.memory_space<vmem>>, vector<2x32x32xf32>
    %c0_4 = arith.constant 0 : index
    %c0_5 = arith.constant 0 : index
    %2 = vector.load %arg2[%c0_4, %c0_5] : memref<16x1xf32, #tpu.memory_space<vmem>>, vector<16x1xf32>
    %c0_6 = arith.constant 0 : index
    %c0_7 = arith.constant 0 : index
    %c0_8 = arith.constant 0 : index
    %3 = vector.load %arg3[%c0_6, %c0_7, %c0_8] : memref<2x1x32xf32, #tpu.memory_space<vmem>>, vector<1x1x32xf32>
    %4 = vector.shape_cast %3 : vector<1x1x32xf32> to vector<1x32xf32>
    %c0_9 = arith.constant 0 : index
    %c0_10 = arith.constant 0 : index
    %c0_11 = arith.constant 0 : index
    %5 = vector.load %arg4[%c0_9, %c0_10, %c0_11] : memref<2x1x32xf32, #tpu.memory_space<vmem>>, vector<1x1x32xf32>
    %6 = vector.shape_cast %5 : vector<1x1x32xf32> to vector<1x32xf32>
    %cst = arith.constant dense<0.000000e+00> : vector<16xf32>
    %7 = vector.multi_reduction <add>, %0, %cst [1] : vector<16x32xf32> to vector<16xf32>
    %8 = vector.shape_cast %7 : vector<16xf32> to vector<16x1xf32>
    %cst_12 = arith.constant 3.200000e+01 : f32
    %9 = vector.broadcast %cst_12 : f32 to vector<16x1xf32>
    %10 = arith.divf %8, %9 : vector<16x1xf32>
    %11 = vector.broadcast %10 : vector<16x1xf32> to vector<16x32xf32>
    %12 = arith.subf %0, %11 : vector<16x32xf32>
    %13 = arith.mulf %12, %12 : vector<16x32xf32>
    %cst_13 = arith.constant dense<0.000000e+00> : vector<16xf32>
    %14 = vector.multi_reduction <add>, %13, %cst_13 [1] : vector<16x32xf32> to vector<16xf32>
    %15 = vector.shape_cast %14 : vector<16xf32> to vector<16x1xf32>
    %cst_14 = arith.constant 3.200000e+01 : f32
    %16 = vector.broadcast %cst_14 : f32 to vector<16x1xf32>
    %17 = arith.divf %15, %16 : vector<16x1xf32>
    %18 = vector.broadcast %10 : vector<16x1xf32> to vector<16x32xf32>
    %19 = arith.subf %0, %18 : vector<16x32xf32>
    %cst_15 = arith.constant 9.99999974E-6 : f32
    %20 = vector.broadcast %cst_15 : f32 to vector<16x1xf32>
    %21 = arith.addf %17, %20 : vector<16x1xf32>
    %22 = math.rsqrt %21 : vector<16x1xf32>
    %23 = vector.broadcast %22 : vector<16x1xf32> to vector<16x32xf32>
    %24 = arith.mulf %19, %23 : vector<16x32xf32>
    %25 = vector.broadcast %4 : vector<1x32xf32> to vector<16x32xf32>
    %26 = arith.mulf %24, %25 : vector<16x32xf32>
    %27 = vector.broadcast %6 : vector<1x32xf32> to vector<16x32xf32>
    %28 = arith.addf %26, %27 : vector<16x32xf32>
    %c0_16 = arith.constant 0 : index
    %c0_17 = arith.constant 0 : index
    %c0_18 = arith.constant 0 : index
    %c0_19 = arith.constant 0 : index
    %29 = vector.load %arg5[%c0_16, %c0_17, %c0_18, %c0_19] : memref<2x4x32x8xf32, #tpu.memory_space<vmem>>, vector<1x1x32x8xf32>
    %30 = vector.shape_cast %29 : vector<1x1x32x8xf32> to vector<32x8xf32>
    %cst_20 = arith.constant dense<0.000000e+00> : vector<16x8xf32>
    %31 = tpu.matmul %28, %30, %cst_20 {dimension_numbers = #tpu.dot_dimension_numbers<[1], [0], [0], [1], [0, 0, 1, 1], [], []>} : vector<16x32xf32>, vector<32x8xf32>, vector<16x8xf32> -> vector<16x8xf32>
    %32 = vector.shape_cast %31 : vector<16x8xf32> to vector<2x8x8xf32>
    %c0_21 = arith.constant 0 : index
    %c1 = arith.constant 1 : index
    %c0_22 = arith.constant 0 : index
    %c0_23 = arith.constant 0 : index
    %33 = vector.load %arg5[%c0_21, %c1, %c0_22, %c0_23] : memref<2x4x32x8xf32, #tpu.memory_space<vmem>>, vector<1x1x32x8xf32>
    %34 = vector.shape_cast %33 : vector<1x1x32x8xf32> to vector<32x8xf32>
    %cst_24 = arith.constant dense<0.000000e+00> : vector<16x8xf32>
    %35 = tpu.matmul %28, %34, %cst_24 {dimension_numbers = #tpu.dot_dimension_numbers<[1], [0], [0], [1], [0, 0, 1, 1], [], []>} : vector<16x32xf32>, vector<32x8xf32>, vector<16x8xf32> -> vector<16x8xf32>
    %36 = vector.shape_cast %35 : vector<16x8xf32> to vector<2x8x8xf32>
    %c0_25 = arith.constant 0 : index
    %c2 = arith.constant 2 : index
    %c0_26 = arith.constant 0 : index
    %c0_27 = arith.constant 0 : index
    %37 = vector.load %arg5[%c0_25, %c2, %c0_26, %c0_27] : memref<2x4x32x8xf32, #tpu.memory_space<vmem>>, vector<1x1x32x8xf32>
    %38 = vector.shape_cast %37 : vector<1x1x32x8xf32> to vector<32x8xf32>
    %cst_28 = arith.constant dense<0.000000e+00> : vector<16x8xf32>
    %39 = tpu.matmul %28, %38, %cst_28 {dimension_numbers = #tpu.dot_dimension_numbers<[1], [0], [0], [1], [0, 0, 1, 1], [], []>} : vector<16x32xf32>, vector<32x8xf32>, vector<16x8xf32> -> vector<16x8xf32>
    %40 = vector.shape_cast %39 : vector<16x8xf32> to vector<2x8x8xf32>
    %c0_29 = arith.constant 0 : index
    %c3 = arith.constant 3 : index
    %c0_30 = arith.constant 0 : index
    %c0_31 = arith.constant 0 : index
    %41 = vector.load %arg5[%c0_29, %c3, %c0_30, %c0_31] : memref<2x4x32x8xf32, #tpu.memory_space<vmem>>, vector<1x1x32x8xf32>
    %42 = vector.shape_cast %41 : vector<1x1x32x8xf32> to vector<32x8xf32>
    %cst_32 = arith.constant dense<0.000000e+00> : vector<16x8xf32>
    %43 = tpu.matmul %28, %42, %cst_32 {dimension_numbers = #tpu.dot_dimension_numbers<[1], [0], [0], [1], [0, 0, 1, 1], [], []>} : vector<16x32xf32>, vector<32x8xf32>, vector<16x8xf32> -> vector<16x8xf32>
    %44 = vector.shape_cast %43 : vector<16x8xf32> to vector<2x8x8xf32>
    %45 = tpu.concatenate %32, %36, %40, %44 in 1 : vector<2x8x8xf32>, vector<2x8x8xf32>, vector<2x8x8xf32>, vector<2x8x8xf32> -> vector<2x32x8xf32>
    %c0_33 = arith.constant 0 : index
    %c0_34 = arith.constant 0 : index
    %c0_35 = arith.constant 0 : index
    %c0_36 = arith.constant 0 : index
    %46 = vector.load %arg6[%c0_33, %c0_34, %c0_35, %c0_36] : memref<2x4x32x8xf32, #tpu.memory_space<vmem>>, vector<1x1x32x8xf32>
    %47 = vector.shape_cast %46 : vector<1x1x32x8xf32> to vector<32x8xf32>
    %cst_37 = arith.constant dense<0.000000e+00> : vector<16x8xf32>
    %48 = tpu.matmul %28, %47, %cst_37 {dimension_numbers = #tpu.dot_dimension_numbers<[1], [0], [0], [1], [0, 0, 1, 1], [], []>} : vector<16x32xf32>, vector<32x8xf32>, vector<16x8xf32> -> vector<16x8xf32>
    %49 = vector.shape_cast %48 : vector<16x8xf32> to vector<2x8x8xf32>
    %c0_38 = arith.constant 0 : index
    %c1_39 = arith.constant 1 : index
    %c0_40 = arith.constant 0 : index
    %c0_41 = arith.constant 0 : index
    %50 = vector.load %arg6[%c0_38, %c1_39, %c0_40, %c0_41] : memref<2x4x32x8xf32, #tpu.memory_space<vmem>>, vector<1x1x32x8xf32>
    %51 = vector.shape_cast %50 : vector<1x1x32x8xf32> to vector<32x8xf32>
    %cst_42 = arith.constant dense<0.000000e+00> : vector<16x8xf32>
    %52 = tpu.matmul %28, %51, %cst_42 {dimension_numbers = #tpu.dot_dimension_numbers<[1], [0], [0], [1], [0, 0, 1, 1], [], []>} : vector<16x32xf32>, vector<32x8xf32>, vector<16x8xf32> -> vector<16x8xf32>
    %53 = vector.shape_cast %52 : vector<16x8xf32> to vector<2x8x8xf32>
    %c0_43 = arith.constant 0 : index
    %c2_44 = arith.constant 2 : index
    %c0_45 = arith.constant 0 : index
    %c0_46 = arith.constant 0 : index
    %54 = vector.load %arg6[%c0_43, %c2_44, %c0_45, %c0_46] : memref<2x4x32x8xf32, #tpu.memory_space<vmem>>, vector<1x1x32x8xf32>
    %55 = vector.shape_cast %54 : vector<1x1x32x8xf32> to vector<32x8xf32>
    %cst_47 = arith.constant dense<0.000000e+00> : vector<16x8xf32>
    %56 = tpu.matmul %28, %55, %cst_47 {dimension_numbers = #tpu.dot_dimension_numbers<[1], [0], [0], [1], [0, 0, 1, 1], [], []>} : vector<16x32xf32>, vector<32x8xf32>, vector<16x8xf32> -> vector<16x8xf32>
    %57 = vector.shape_cast %56 : vector<16x8xf32> to vector<2x8x8xf32>
    %c0_48 = arith.constant 0 : index
    %c3_49 = arith.constant 3 : index
    %c0_50 = arith.constant 0 : index
    %c0_51 = arith.constant 0 : index
    %58 = vector.load %arg6[%c0_48, %c3_49, %c0_50, %c0_51] : memref<2x4x32x8xf32, #tpu.memory_space<vmem>>, vector<1x1x32x8xf32>
    %59 = vector.shape_cast %58 : vector<1x1x32x8xf32> to vector<32x8xf32>
    %cst_52 = arith.constant dense<0.000000e+00> : vector<16x8xf32>
    %60 = tpu.matmul %28, %59, %cst_52 {dimension_numbers = #tpu.dot_dimension_numbers<[1], [0], [0], [1], [0, 0, 1, 1], [], []>} : vector<16x32xf32>, vector<32x8xf32>, vector<16x8xf32> -> vector<16x8xf32>
    %61 = vector.shape_cast %60 : vector<16x8xf32> to vector<2x8x8xf32>
    %62 = tpu.concatenate %49, %53, %57, %61 in 1 : vector<2x8x8xf32>, vector<2x8x8xf32>, vector<2x8x8xf32>, vector<2x8x8xf32> -> vector<2x32x8xf32>
    %c0_53 = arith.constant 0 : index
    %c0_54 = arith.constant 0 : index
    %c0_55 = arith.constant 0 : index
    %c0_56 = arith.constant 0 : index
    %63 = vector.load %arg7[%c0_53, %c0_54, %c0_55, %c0_56] : memref<2x4x32x8xf32, #tpu.memory_space<vmem>>, vector<1x1x32x8xf32>
    %64 = vector.shape_cast %63 : vector<1x1x32x8xf32> to vector<32x8xf32>
    %cst_57 = arith.constant dense<0.000000e+00> : vector<16x8xf32>
    %65 = tpu.matmul %28, %64, %cst_57 {dimension_numbers = #tpu.dot_dimension_numbers<[1], [0], [0], [1], [0, 0, 1, 1], [], []>} : vector<16x32xf32>, vector<32x8xf32>, vector<16x8xf32> -> vector<16x8xf32>
    %66 = vector.shape_cast %65 : vector<16x8xf32> to vector<2x8x8xf32>
    %c0_58 = arith.constant 0 : index
    %c1_59 = arith.constant 1 : index
    %c0_60 = arith.constant 0 : index
    %c0_61 = arith.constant 0 : index
    %67 = vector.load %arg7[%c0_58, %c1_59, %c0_60, %c0_61] : memref<2x4x32x8xf32, #tpu.memory_space<vmem>>, vector<1x1x32x8xf32>
    %68 = vector.shape_cast %67 : vector<1x1x32x8xf32> to vector<32x8xf32>
    %cst_62 = arith.constant dense<0.000000e+00> : vector<16x8xf32>
    %69 = tpu.matmul %28, %68, %cst_62 {dimension_numbers = #tpu.dot_dimension_numbers<[1], [0], [0], [1], [0, 0, 1, 1], [], []>} : vector<16x32xf32>, vector<32x8xf32>, vector<16x8xf32> -> vector<16x8xf32>
    %70 = vector.shape_cast %69 : vector<16x8xf32> to vector<2x8x8xf32>
    %c0_63 = arith.constant 0 : index
    %c2_64 = arith.constant 2 : index
    %c0_65 = arith.constant 0 : index
    %c0_66 = arith.constant 0 : index
    %71 = vector.load %arg7[%c0_63, %c2_64, %c0_65, %c0_66] : memref<2x4x32x8xf32, #tpu.memory_space<vmem>>, vector<1x1x32x8xf32>
    %72 = vector.shape_cast %71 : vector<1x1x32x8xf32> to vector<32x8xf32>
    %cst_67 = arith.constant dense<0.000000e+00> : vector<16x8xf32>
    %73 = tpu.matmul %28, %72, %cst_67 {dimension_numbers = #tpu.dot_dimension_numbers<[1], [0], [0], [1], [0, 0, 1, 1], [], []>} : vector<16x32xf32>, vector<32x8xf32>, vector<16x8xf32> -> vector<16x8xf32>
    %74 = vector.shape_cast %73 : vector<16x8xf32> to vector<2x8x8xf32>
    %c0_68 = arith.constant 0 : index
    %c3_69 = arith.constant 3 : index
    %c0_70 = arith.constant 0 : index
    %c0_71 = arith.constant 0 : index
    %75 = vector.load %arg7[%c0_68, %c3_69, %c0_70, %c0_71] : memref<2x4x32x8xf32, #tpu.memory_space<vmem>>, vector<1x1x32x8xf32>
    %76 = vector.shape_cast %75 : vector<1x1x32x8xf32> to vector<32x8xf32>
    %cst_72 = arith.constant dense<0.000000e+00> : vector<16x8xf32>
    %77 = tpu.matmul %28, %76, %cst_72 {dimension_numbers = #tpu.dot_dimension_numbers<[1], [0], [0], [1], [0, 0, 1, 1], [], []>} : vector<16x32xf32>, vector<32x8xf32>, vector<16x8xf32> -> vector<16x8xf32>
    %78 = vector.shape_cast %77 : vector<16x8xf32> to vector<2x8x8xf32>
    %79 = tpu.concatenate %66, %70, %74, %78 in 1 : vector<2x8x8xf32>, vector<2x8x8xf32>, vector<2x8x8xf32>, vector<2x8x8xf32> -> vector<2x32x8xf32>
    "tpu.trace_start"() <{level = 10 : i32, message = "bqd,bkd->bqk"}> : () -> ()
    %cst_73 = arith.constant dense<0.000000e+00> : vector<2x32x32xf32>
    %80 = tpu.matmul %45, %62, %cst_73 {dimension_numbers = #tpu.dot_dimension_numbers<[2], [2], [1], [1], [0, 0, 0, 1, 1, 1], [0], [0]>} : vector<2x32x8xf32>, vector<2x32x8xf32>, vector<2x32x32xf32> -> vector<2x32x32xf32>
    "tpu.trace_stop"() : () -> ()
    %81 = arith.addf %80, %1 : vector<2x32x32xf32>
    %cst_74 = arith.constant dense<0xFF800000> : vector<2x32xf32>
    %82 = vector.multi_reduction <maximumf>, %81, %cst_74 [2] : vector<2x32x32xf32> to vector<2x32xf32>
    %83 = vector.shape_cast %82 : vector<2x32xf32> to vector<2x32x1xf32>
    %84 = vector.broadcast %83 : vector<2x32x1xf32> to vector<2x32x32xf32>
    %85 = arith.subf %81, %84 : vector<2x32x32xf32>
    %86 = math.exp %85 : vector<2x32x32xf32>
    %cst_75 = arith.constant dense<0.000000e+00> : vector<2x32xf32>
    %87 = vector.multi_reduction <add>, %86, %cst_75 [2] : vector<2x32x32xf32> to vector<2x32xf32>
    %88 = vector.shape_cast %87 : vector<2x32xf32> to vector<2x32x1xf32>
    %89 = tpu.reciprocal %88 {approx = true} : vector<2x32x1xf32> -> vector<2x32x1xf32>
    %90 = vector.broadcast %89 : vector<2x32x1xf32> to vector<2x32x32xf32>
    %91 = arith.mulf %86, %90 : vector<2x32x32xf32>
    "tpu.trace_start"() <{level = 10 : i32, message = "bqk,bkd->bqd"}> : () -> ()
    %cst_76 = arith.constant dense<0.000000e+00> : vector<2x32x8xf32>
    %92 = tpu.matmul %91, %79, %cst_76 {dimension_numbers = #tpu.dot_dimension_numbers<[2], [1], [1], [2], [0, 0, 0, 1, 1, 2], [0], [0]>} : vector<2x32x32xf32>, vector<2x32x8xf32>, vector<2x32x8xf32> -> vector<2x32x8xf32>
    "tpu.trace_stop"() : () -> ()
    %93 = vector.extract_strided_slice %92 {offsets = [0, 0, 0], sizes = [2, 8, 8], strides = [1, 1, 1]} : vector<2x32x8xf32> to vector<2x8x8xf32>
    %94 = vector.shape_cast %93 : vector<2x8x8xf32> to vector<16x8xf32>
    %c0_77 = arith.constant 0 : index
    %c0_78 = arith.constant 0 : index
    %c0_79 = arith.constant 0 : index
    %c0_80 = arith.constant 0 : index
    %95 = vector.load %arg8[%c0_77, %c0_78, %c0_79, %c0_80] : memref<2x4x8x32xf32, #tpu.memory_space<vmem>>, vector<1x1x8x32xf32>
    %96 = vector.shape_cast %95 : vector<1x1x8x32xf32> to vector<8x32xf32>
    %cst_81 = arith.constant dense<0.000000e+00> : vector<16x32xf32>
    %97 = tpu.matmul %94, %96, %cst_81 {dimension_numbers = #tpu.dot_dimension_numbers<[1], [0], [0], [1], [0, 0, 1, 1], [], []>} : vector<16x8xf32>, vector<8x32xf32>, vector<16x32xf32> -> vector<16x32xf32>
    %98 = vector.extract_strided_slice %92 {offsets = [0, 8, 0], sizes = [2, 8, 8], strides = [1, 1, 1]} : vector<2x32x8xf32> to vector<2x8x8xf32>
    %99 = vector.shape_cast %98 : vector<2x8x8xf32> to vector<16x8xf32>
    %c0_82 = arith.constant 0 : index
    %c1_83 = arith.constant 1 : index
    %c0_84 = arith.constant 0 : index
    %c0_85 = arith.constant 0 : index
    %100 = vector.load %arg8[%c0_82, %c1_83, %c0_84, %c0_85] : memref<2x4x8x32xf32, #tpu.memory_space<vmem>>, vector<1x1x8x32xf32>
    %101 = vector.shape_cast %100 : vector<1x1x8x32xf32> to vector<8x32xf32>
    %cst_86 = arith.constant dense<0.000000e+00> : vector<16x32xf32>
    %102 = tpu.matmul %99, %101, %cst_86 {dimension_numbers = #tpu.dot_dimension_numbers<[1], [0], [0], [1], [0, 0, 1, 1], [], []>} : vector<16x8xf32>, vector<8x32xf32>, vector<16x32xf32> -> vector<16x32xf32>
    %103 = arith.addf %97, %102 : vector<16x32xf32>
    %104 = vector.extract_strided_slice %92 {offsets = [0, 16, 0], sizes = [2, 8, 8], strides = [1, 1, 1]} : vector<2x32x8xf32> to vector<2x8x8xf32>
    %105 = vector.shape_cast %104 : vector<2x8x8xf32> to vector<16x8xf32>
    %c0_87 = arith.constant 0 : index
    %c2_88 = arith.constant 2 : index
    %c0_89 = arith.constant 0 : index
    %c0_90 = arith.constant 0 : index
    %106 = vector.load %arg8[%c0_87, %c2_88, %c0_89, %c0_90] : memref<2x4x8x32xf32, #tpu.memory_space<vmem>>, vector<1x1x8x32xf32>
    %107 = vector.shape_cast %106 : vector<1x1x8x32xf32> to vector<8x32xf32>
    %cst_91 = arith.constant dense<0.000000e+00> : vector<16x32xf32>
    %108 = tpu.matmul %105, %107, %cst_91 {dimension_numbers = #tpu.dot_dimension_numbers<[1], [0], [0], [1], [0, 0, 1, 1], [], []>} : vector<16x8xf32>, vector<8x32xf32>, vector<16x32xf32> -> vector<16x32xf32>
    %109 = arith.addf %103, %108 : vector<16x32xf32>
    %110 = vector.extract_strided_slice %92 {offsets = [0, 24, 0], sizes = [2, 8, 8], strides = [1, 1, 1]} : vector<2x32x8xf32> to vector<2x8x8xf32>
    %111 = vector.shape_cast %110 : vector<2x8x8xf32> to vector<16x8xf32>
    %c0_92 = arith.constant 0 : index
    %c3_93 = arith.constant 3 : index
    %c0_94 = arith.constant 0 : index
    %c0_95 = arith.constant 0 : index
    %112 = vector.load %arg8[%c0_92, %c3_93, %c0_94, %c0_95] : memref<2x4x8x32xf32, #tpu.memory_space<vmem>>, vector<1x1x8x32xf32>
    %113 = vector.shape_cast %112 : vector<1x1x8x32xf32> to vector<8x32xf32>
    %cst_96 = arith.constant dense<0.000000e+00> : vector<16x32xf32>
    %114 = tpu.matmul %111, %113, %cst_96 {dimension_numbers = #tpu.dot_dimension_numbers<[1], [0], [0], [1], [0, 0, 1, 1], [], []>} : vector<16x8xf32>, vector<8x32xf32>, vector<16x32xf32> -> vector<16x32xf32>
    %115 = arith.addf %109, %114 : vector<16x32xf32>
    %c0_97 = arith.constant 0 : index
    %c0_98 = arith.constant 0 : index
    %c0_99 = arith.constant 0 : index
    %116 = vector.load %arg9[%c0_97, %c0_98, %c0_99] : memref<2x1x32xf32, #tpu.memory_space<vmem>>, vector<1x1x32xf32>
    %117 = vector.shape_cast %116 : vector<1x1x32xf32> to vector<1x32xf32>
    %118 = vector.broadcast %117 : vector<1x32xf32> to vector<16x32xf32>
    %119 = arith.addf %115, %118 : vector<16x32xf32>
    %120 = vector.broadcast %2 : vector<16x1xf32> to vector<16x32xf32>
    %121 = arith.mulf %119, %120 : vector<16x32xf32>
    %122 = arith.addf %0, %121 : vector<16x32xf32>
    %c0_100 = arith.constant 0 : index
    %c0_101 = arith.constant 0 : index
    %c0_102 = arith.constant 0 : index
    %123 = vector.load %arg10[%c0_100, %c0_101, %c0_102] : memref<2x1x32xf32, #tpu.memory_space<vmem>>, vector<1x1x32xf32>
    %124 = vector.shape_cast %123 : vector<1x1x32xf32> to vector<1x32xf32>
    %c0_103 = arith.constant 0 : index
    %c0_104 = arith.constant 0 : index
    %c0_105 = arith.constant 0 : index
    %125 = vector.load %arg11[%c0_103, %c0_104, %c0_105] : memref<2x1x32xf32, #tpu.memory_space<vmem>>, vector<1x1x32xf32>
    %126 = vector.shape_cast %125 : vector<1x1x32xf32> to vector<1x32xf32>
    %cst_106 = arith.constant dense<0.000000e+00> : vector<16xf32>
    %127 = vector.multi_reduction <add>, %122, %cst_106 [1] : vector<16x32xf32> to vector<16xf32>
    %128 = vector.shape_cast %127 : vector<16xf32> to vector<16x1xf32>
    %cst_107 = arith.constant 3.200000e+01 : f32
    %129 = vector.broadcast %cst_107 : f32 to vector<16x1xf32>
    %130 = arith.divf %128, %129 : vector<16x1xf32>
    %131 = vector.broadcast %130 : vector<16x1xf32> to vector<16x32xf32>
    %132 = arith.subf %122, %131 : vector<16x32xf32>
    %133 = arith.mulf %132, %132 : vector<16x32xf32>
    %cst_108 = arith.constant dense<0.000000e+00> : vector<16xf32>
    %134 = vector.multi_reduction <add>, %133, %cst_108 [1] : vector<16x32xf32> to vector<16xf32>
    %135 = vector.shape_cast %134 : vector<16xf32> to vector<16x1xf32>
    %cst_109 = arith.constant 3.200000e+01 : f32
    %136 = vector.broadcast %cst_109 : f32 to vector<16x1xf32>
    %137 = arith.divf %135, %136 : vector<16x1xf32>
    %138 = vector.broadcast %130 : vector<16x1xf32> to vector<16x32xf32>
    %139 = arith.subf %122, %138 : vector<16x32xf32>
    %cst_110 = arith.constant 9.99999974E-6 : f32
    %140 = vector.broadcast %cst_110 : f32 to vector<16x1xf32>
    %141 = arith.addf %137, %140 : vector<16x1xf32>
    %142 = math.rsqrt %141 : vector<16x1xf32>
    %143 = vector.broadcast %142 : vector<16x1xf32> to vector<16x32xf32>
    %144 = arith.mulf %139, %143 : vector<16x32xf32>
    %145 = vector.broadcast %124 : vector<1x32xf32> to vector<16x32xf32>
    %146 = arith.mulf %144, %145 : vector<16x32xf32>
    %147 = vector.broadcast %126 : vector<1x32xf32> to vector<16x32xf32>
    %148 = arith.addf %146, %147 : vector<16x32xf32>
    %c0_111 = arith.constant 0 : index
    %c0_112 = arith.constant 0 : index
    %c0_113 = arith.constant 0 : index
    %149 = vector.load %arg12[%c0_111, %c0_112, %c0_113] : memref<2x32x64xf32, #tpu.memory_space<vmem>>, vector<1x32x64xf32>
    %150 = vector.shape_cast %149 : vector<1x32x64xf32> to vector<32x64xf32>
    %cst_114 = arith.constant dense<0.000000e+00> : vector<16x64xf32>
    %151 = tpu.matmul %148, %150, %cst_114 {dimension_numbers = #tpu.dot_dimension_numbers<[1], [0], [0], [1], [0, 0, 1, 1], [], []>} : vector<16x32xf32>, vector<32x64xf32>, vector<16x64xf32> -> vector<16x64xf32>
    %c0_115 = arith.constant 0 : index
    %c0_116 = arith.constant 0 : index
    %c0_117 = arith.constant 0 : index
    %152 = vector.load %arg13[%c0_115, %c0_116, %c0_117] : memref<2x1x64xf32, #tpu.memory_space<vmem>>, vector<1x1x64xf32>
    %153 = vector.shape_cast %152 : vector<1x1x64xf32> to vector<1x64xf32>
    %154 = vector.broadcast %153 : vector<1x64xf32> to vector<16x64xf32>
    %155 = arith.addf %151, %154 : vector<16x64xf32>
    %cst_118 = arith.constant 5.000000e-01 : f32
    %156 = vector.broadcast %cst_118 : f32 to vector<16x64xf32>
    %157 = arith.mulf %155, %156 : vector<16x64xf32>
    %cst_119 = arith.constant 1.41421354 : f32
    %158 = vector.broadcast %cst_119 : f32 to vector<16x64xf32>
    %159 = arith.divf %155, %158 : vector<16x64xf32>
    %160 = math.erf %159 : vector<16x64xf32>
    %cst_120 = arith.constant 1.000000e+00 : f32
    %161 = vector.broadcast %cst_120 : f32 to vector<16x64xf32>
    %162 = arith.addf %161, %160 : vector<16x64xf32>
    %163 = arith.mulf %157, %162 : vector<16x64xf32>
    %c0_121 = arith.constant 0 : index
    %c0_122 = arith.constant 0 : index
    %c0_123 = arith.constant 0 : index
    %164 = vector.load %arg14[%c0_121, %c0_122, %c0_123] : memref<2x64x32xf32, #tpu.memory_space<vmem>>, vector<1x64x32xf32>
    %165 = vector.shape_cast %164 : vector<1x64x32xf32> to vector<64x32xf32>
    %cst_124 = arith.constant dense<0.000000e+00> : vector<16x32xf32>
    %166 = tpu.matmul %163, %165, %cst_124 {dimension_numbers = #tpu.dot_dimension_numbers<[1], [0], [0], [1], [0, 0, 1, 1], [], []>} : vector<16x64xf32>, vector<64x32xf32>, vector<16x32xf32> -> vector<16x32xf32>
    %167 = arith.addf %122, %166 : vector<16x32xf32>
    %c0_125 = arith.constant 0 : index
    %c0_126 = arith.constant 0 : index
    %c0_127 = arith.constant 0 : index
    %168 = vector.load %arg15[%c0_125, %c0_126, %c0_127] : memref<2x1x32xf32, #tpu.memory_space<vmem>>, vector<1x1x32xf32>
    %169 = vector.shape_cast %168 : vector<1x1x32xf32> to vector<1x32xf32>
    %170 = vector.broadcast %169 : vector<1x32xf32> to vector<16x32xf32>
    %171 = arith.addf %167, %170 : vector<16x32xf32>
    %c1_128 = arith.constant 1 : index
    %c0_129 = arith.constant 0 : index
    %c0_130 = arith.constant 0 : index
    %172 = vector.load %arg3[%c1_128, %c0_129, %c0_130] : memref<2x1x32xf32, #tpu.memory_space<vmem>>, vector<1x1x32xf32>
    %173 = vector.shape_cast %172 : vector<1x1x32xf32> to vector<1x32xf32>
    %c1_131 = arith.constant 1 : index
    %c0_132 = arith.constant 0 : index
    %c0_133 = arith.constant 0 : index
    %174 = vector.load %arg4[%c1_131, %c0_132, %c0_133] : memref<2x1x32xf32, #tpu.memory_space<vmem>>, vector<1x1x32xf32>
    %175 = vector.shape_cast %174 : vector<1x1x32xf32> to vector<1x32xf32>
    %cst_134 = arith.constant dense<0.000000e+00> : vector<16xf32>
    %176 = vector.multi_reduction <add>, %171, %cst_134 [1] : vector<16x32xf32> to vector<16xf32>
    %177 = vector.shape_cast %176 : vector<16xf32> to vector<16x1xf32>
    %cst_135 = arith.constant 3.200000e+01 : f32
    %178 = vector.broadcast %cst_135 : f32 to vector<16x1xf32>
    %179 = arith.divf %177, %178 : vector<16x1xf32>
    %180 = vector.broadcast %179 : vector<16x1xf32> to vector<16x32xf32>
    %181 = arith.subf %171, %180 : vector<16x32xf32>
    %182 = arith.mulf %181, %181 : vector<16x32xf32>
    %cst_136 = arith.constant dense<0.000000e+00> : vector<16xf32>
    %183 = vector.multi_reduction <add>, %182, %cst_136 [1] : vector<16x32xf32> to vector<16xf32>
    %184 = vector.shape_cast %183 : vector<16xf32> to vector<16x1xf32>
    %cst_137 = arith.constant 3.200000e+01 : f32
    %185 = vector.broadcast %cst_137 : f32 to vector<16x1xf32>
    %186 = arith.divf %184, %185 : vector<16x1xf32>
    %187 = vector.broadcast %179 : vector<16x1xf32> to vector<16x32xf32>
    %188 = arith.subf %171, %187 : vector<16x32xf32>
    %cst_138 = arith.constant 9.99999974E-6 : f32
    %189 = vector.broadcast %cst_138 : f32 to vector<16x1xf32>
    %190 = arith.addf %186, %189 : vector<16x1xf32>
    %191 = math.rsqrt %190 : vector<16x1xf32>
    %192 = vector.broadcast %191 : vector<16x1xf32> to vector<16x32xf32>
    %193 = arith.mulf %188, %192 : vector<16x32xf32>
    %194 = vector.broadcast %173 : vector<1x32xf32> to vector<16x32xf32>
    %195 = arith.mulf %193, %194 : vector<16x32xf32>
    %196 = vector.broadcast %175 : vector<1x32xf32> to vector<16x32xf32>
    %197 = arith.addf %195, %196 : vector<16x32xf32>
    %c1_139 = arith.constant 1 : index
    %c0_140 = arith.constant 0 : index
    %c0_141 = arith.constant 0 : index
    %c0_142 = arith.constant 0 : index
    %198 = vector.load %arg5[%c1_139, %c0_140, %c0_141, %c0_142] : memref<2x4x32x8xf32, #tpu.memory_space<vmem>>, vector<1x1x32x8xf32>
    %199 = vector.shape_cast %198 : vector<1x1x32x8xf32> to vector<32x8xf32>
    %cst_143 = arith.constant dense<0.000000e+00> : vector<16x8xf32>
    %200 = tpu.matmul %197, %199, %cst_143 {dimension_numbers = #tpu.dot_dimension_numbers<[1], [0], [0], [1], [0, 0, 1, 1], [], []>} : vector<16x32xf32>, vector<32x8xf32>, vector<16x8xf32> -> vector<16x8xf32>
    %201 = vector.shape_cast %200 : vector<16x8xf32> to vector<2x8x8xf32>
    %c1_144 = arith.constant 1 : index
    %c1_145 = arith.constant 1 : index
    %c0_146 = arith.constant 0 : index
    %c0_147 = arith.constant 0 : index
    %202 = vector.load %arg5[%c1_144, %c1_145, %c0_146, %c0_147] : memref<2x4x32x8xf32, #tpu.memory_space<vmem>>, vector<1x1x32x8xf32>
    %203 = vector.shape_cast %202 : vector<1x1x32x8xf32> to vector<32x8xf32>
    %cst_148 = arith.constant dense<0.000000e+00> : vector<16x8xf32>
    %204 = tpu.matmul %197, %203, %cst_148 {dimension_numbers = #tpu.dot_dimension_numbers<[1], [0], [0], [1], [0, 0, 1, 1], [], []>} : vector<16x32xf32>, vector<32x8xf32>, vector<16x8xf32> -> vector<16x8xf32>
    %205 = vector.shape_cast %204 : vector<16x8xf32> to vector<2x8x8xf32>
    %c1_149 = arith.constant 1 : index
    %c2_150 = arith.constant 2 : index
    %c0_151 = arith.constant 0 : index
    %c0_152 = arith.constant 0 : index
    %206 = vector.load %arg5[%c1_149, %c2_150, %c0_151, %c0_152] : memref<2x4x32x8xf32, #tpu.memory_space<vmem>>, vector<1x1x32x8xf32>
    %207 = vector.shape_cast %206 : vector<1x1x32x8xf32> to vector<32x8xf32>
    %cst_153 = arith.constant dense<0.000000e+00> : vector<16x8xf32>
    %208 = tpu.matmul %197, %207, %cst_153 {dimension_numbers = #tpu.dot_dimension_numbers<[1], [0], [0], [1], [0, 0, 1, 1], [], []>} : vector<16x32xf32>, vector<32x8xf32>, vector<16x8xf32> -> vector<16x8xf32>
    %209 = vector.shape_cast %208 : vector<16x8xf32> to vector<2x8x8xf32>
    %c1_154 = arith.constant 1 : index
    %c3_155 = arith.constant 3 : index
    %c0_156 = arith.constant 0 : index
    %c0_157 = arith.constant 0 : index
    %210 = vector.load %arg5[%c1_154, %c3_155, %c0_156, %c0_157] : memref<2x4x32x8xf32, #tpu.memory_space<vmem>>, vector<1x1x32x8xf32>
    %211 = vector.shape_cast %210 : vector<1x1x32x8xf32> to vector<32x8xf32>
    %cst_158 = arith.constant dense<0.000000e+00> : vector<16x8xf32>
    %212 = tpu.matmul %197, %211, %cst_158 {dimension_numbers = #tpu.dot_dimension_numbers<[1], [0], [0], [1], [0, 0, 1, 1], [], []>} : vector<16x32xf32>, vector<32x8xf32>, vector<16x8xf32> -> vector<16x8xf32>
    %213 = vector.shape_cast %212 : vector<16x8xf32> to vector<2x8x8xf32>
    %214 = tpu.concatenate %201, %205, %209, %213 in 1 : vector<2x8x8xf32>, vector<2x8x8xf32>, vector<2x8x8xf32>, vector<2x8x8xf32> -> vector<2x32x8xf32>
    %c1_159 = arith.constant 1 : index
    %c0_160 = arith.constant 0 : index
    %c0_161 = arith.constant 0 : index
    %c0_162 = arith.constant 0 : index
    %215 = vector.load %arg6[%c1_159, %c0_160, %c0_161, %c0_162] : memref<2x4x32x8xf32, #tpu.memory_space<vmem>>, vector<1x1x32x8xf32>
    %216 = vector.shape_cast %215 : vector<1x1x32x8xf32> to vector<32x8xf32>
    %cst_163 = arith.constant dense<0.000000e+00> : vector<16x8xf32>
    %217 = tpu.matmul %197, %216, %cst_163 {dimension_numbers = #tpu.dot_dimension_numbers<[1], [0], [0], [1], [0, 0, 1, 1], [], []>} : vector<16x32xf32>, vector<32x8xf32>, vector<16x8xf32> -> vector<16x8xf32>
    %218 = vector.shape_cast %217 : vector<16x8xf32> to vector<2x8x8xf32>
    %c1_164 = arith.constant 1 : index
    %c1_165 = arith.constant 1 : index
    %c0_166 = arith.constant 0 : index
    %c0_167 = arith.constant 0 : index
    %219 = vector.load %arg6[%c1_164, %c1_165, %c0_166, %c0_167] : memref<2x4x32x8xf32, #tpu.memory_space<vmem>>, vector<1x1x32x8xf32>
    %220 = vector.shape_cast %219 : vector<1x1x32x8xf32> to vector<32x8xf32>
    %cst_168 = arith.constant dense<0.000000e+00> : vector<16x8xf32>
    %221 = tpu.matmul %197, %220, %cst_168 {dimension_numbers = #tpu.dot_dimension_numbers<[1], [0], [0], [1], [0, 0, 1, 1], [], []>} : vector<16x32xf32>, vector<32x8xf32>, vector<16x8xf32> -> vector<16x8xf32>
    %222 = vector.shape_cast %221 : vector<16x8xf32> to vector<2x8x8xf32>
    %c1_169 = arith.constant 1 : index
    %c2_170 = arith.constant 2 : index
    %c0_171 = arith.constant 0 : index
    %c0_172 = arith.constant 0 : index
    %223 = vector.load %arg6[%c1_169, %c2_170, %c0_171, %c0_172] : memref<2x4x32x8xf32, #tpu.memory_space<vmem>>, vector<1x1x32x8xf32>
    %224 = vector.shape_cast %223 : vector<1x1x32x8xf32> to vector<32x8xf32>
    %cst_173 = arith.constant dense<0.000000e+00> : vector<16x8xf32>
    %225 = tpu.matmul %197, %224, %cst_173 {dimension_numbers = #tpu.dot_dimension_numbers<[1], [0], [0], [1], [0, 0, 1, 1], [], []>} : vector<16x32xf32>, vector<32x8xf32>, vector<16x8xf32> -> vector<16x8xf32>
    %226 = vector.shape_cast %225 : vector<16x8xf32> to vector<2x8x8xf32>
    %c1_174 = arith.constant 1 : index
    %c3_175 = arith.constant 3 : index
    %c0_176 = arith.constant 0 : index
    %c0_177 = arith.constant 0 : index
    %227 = vector.load %arg6[%c1_174, %c3_175, %c0_176, %c0_177] : memref<2x4x32x8xf32, #tpu.memory_space<vmem>>, vector<1x1x32x8xf32>
    %228 = vector.shape_cast %227 : vector<1x1x32x8xf32> to vector<32x8xf32>
    %cst_178 = arith.constant dense<0.000000e+00> : vector<16x8xf32>
    %229 = tpu.matmul %197, %228, %cst_178 {dimension_numbers = #tpu.dot_dimension_numbers<[1], [0], [0], [1], [0, 0, 1, 1], [], []>} : vector<16x32xf32>, vector<32x8xf32>, vector<16x8xf32> -> vector<16x8xf32>
    %230 = vector.shape_cast %229 : vector<16x8xf32> to vector<2x8x8xf32>
    %231 = tpu.concatenate %218, %222, %226, %230 in 1 : vector<2x8x8xf32>, vector<2x8x8xf32>, vector<2x8x8xf32>, vector<2x8x8xf32> -> vector<2x32x8xf32>
    %c1_179 = arith.constant 1 : index
    %c0_180 = arith.constant 0 : index
    %c0_181 = arith.constant 0 : index
    %c0_182 = arith.constant 0 : index
    %232 = vector.load %arg7[%c1_179, %c0_180, %c0_181, %c0_182] : memref<2x4x32x8xf32, #tpu.memory_space<vmem>>, vector<1x1x32x8xf32>
    %233 = vector.shape_cast %232 : vector<1x1x32x8xf32> to vector<32x8xf32>
    %cst_183 = arith.constant dense<0.000000e+00> : vector<16x8xf32>
    %234 = tpu.matmul %197, %233, %cst_183 {dimension_numbers = #tpu.dot_dimension_numbers<[1], [0], [0], [1], [0, 0, 1, 1], [], []>} : vector<16x32xf32>, vector<32x8xf32>, vector<16x8xf32> -> vector<16x8xf32>
    %235 = vector.shape_cast %234 : vector<16x8xf32> to vector<2x8x8xf32>
    %c1_184 = arith.constant 1 : index
    %c1_185 = arith.constant 1 : index
    %c0_186 = arith.constant 0 : index
    %c0_187 = arith.constant 0 : index
    %236 = vector.load %arg7[%c1_184, %c1_185, %c0_186, %c0_187] : memref<2x4x32x8xf32, #tpu.memory_space<vmem>>, vector<1x1x32x8xf32>
    %237 = vector.shape_cast %236 : vector<1x1x32x8xf32> to vector<32x8xf32>
    %cst_188 = arith.constant dense<0.000000e+00> : vector<16x8xf32>
    %238 = tpu.matmul %197, %237, %cst_188 {dimension_numbers = #tpu.dot_dimension_numbers<[1], [0], [0], [1], [0, 0, 1, 1], [], []>} : vector<16x32xf32>, vector<32x8xf32>, vector<16x8xf32> -> vector<16x8xf32>
    %239 = vector.shape_cast %238 : vector<16x8xf32> to vector<2x8x8xf32>
    %c1_189 = arith.constant 1 : index
    %c2_190 = arith.constant 2 : index
    %c0_191 = arith.constant 0 : index
    %c0_192 = arith.constant 0 : index
    %240 = vector.load %arg7[%c1_189, %c2_190, %c0_191, %c0_192] : memref<2x4x32x8xf32, #tpu.memory_space<vmem>>, vector<1x1x32x8xf32>
    %241 = vector.shape_cast %240 : vector<1x1x32x8xf32> to vector<32x8xf32>
    %cst_193 = arith.constant dense<0.000000e+00> : vector<16x8xf32>
    %242 = tpu.matmul %197, %241, %cst_193 {dimension_numbers = #tpu.dot_dimension_numbers<[1], [0], [0], [1], [0, 0, 1, 1], [], []>} : vector<16x32xf32>, vector<32x8xf32>, vector<16x8xf32> -> vector<16x8xf32>
    %243 = vector.shape_cast %242 : vector<16x8xf32> to vector<2x8x8xf32>
    %c1_194 = arith.constant 1 : index
    %c3_195 = arith.constant 3 : index
    %c0_196 = arith.constant 0 : index
    %c0_197 = arith.constant 0 : index
    %244 = vector.load %arg7[%c1_194, %c3_195, %c0_196, %c0_197] : memref<2x4x32x8xf32, #tpu.memory_space<vmem>>, vector<1x1x32x8xf32>
    %245 = vector.shape_cast %244 : vector<1x1x32x8xf32> to vector<32x8xf32>
    %cst_198 = arith.constant dense<0.000000e+00> : vector<16x8xf32>
    %246 = tpu.matmul %197, %245, %cst_198 {dimension_numbers = #tpu.dot_dimension_numbers<[1], [0], [0], [1], [0, 0, 1, 1], [], []>} : vector<16x32xf32>, vector<32x8xf32>, vector<16x8xf32> -> vector<16x8xf32>
    %247 = vector.shape_cast %246 : vector<16x8xf32> to vector<2x8x8xf32>
    %248 = tpu.concatenate %235, %239, %243, %247 in 1 : vector<2x8x8xf32>, vector<2x8x8xf32>, vector<2x8x8xf32>, vector<2x8x8xf32> -> vector<2x32x8xf32>
    "tpu.trace_start"() <{level = 10 : i32, message = "bqd,bkd->bqk"}> : () -> ()
    %cst_199 = arith.constant dense<0.000000e+00> : vector<2x32x32xf32>
    %249 = tpu.matmul %214, %231, %cst_199 {dimension_numbers = #tpu.dot_dimension_numbers<[2], [2], [1], [1], [0, 0, 0, 1, 1, 1], [0], [0]>} : vector<2x32x8xf32>, vector<2x32x8xf32>, vector<2x32x32xf32> -> vector<2x32x32xf32>
    "tpu.trace_stop"() : () -> ()
    %250 = arith.addf %249, %1 : vector<2x32x32xf32>
    %cst_200 = arith.constant dense<0xFF800000> : vector<2x32xf32>
    %251 = vector.multi_reduction <maximumf>, %250, %cst_200 [2] : vector<2x32x32xf32> to vector<2x32xf32>
    %252 = vector.shape_cast %251 : vector<2x32xf32> to vector<2x32x1xf32>
    %253 = vector.broadcast %252 : vector<2x32x1xf32> to vector<2x32x32xf32>
    %254 = arith.subf %250, %253 : vector<2x32x32xf32>
    %255 = math.exp %254 : vector<2x32x32xf32>
    %cst_201 = arith.constant dense<0.000000e+00> : vector<2x32xf32>
    %256 = vector.multi_reduction <add>, %255, %cst_201 [2] : vector<2x32x32xf32> to vector<2x32xf32>
    %257 = vector.shape_cast %256 : vector<2x32xf32> to vector<2x32x1xf32>
    %258 = tpu.reciprocal %257 {approx = true} : vector<2x32x1xf32> -> vector<2x32x1xf32>
    %259 = vector.broadcast %258 : vector<2x32x1xf32> to vector<2x32x32xf32>
    %260 = arith.mulf %255, %259 : vector<2x32x32xf32>
    "tpu.trace_start"() <{level = 10 : i32, message = "bqk,bkd->bqd"}> : () -> ()
    %cst_202 = arith.constant dense<0.000000e+00> : vector<2x32x8xf32>
    %261 = tpu.matmul %260, %248, %cst_202 {dimension_numbers = #tpu.dot_dimension_numbers<[2], [1], [1], [2], [0, 0, 0, 1, 1, 2], [0], [0]>} : vector<2x32x32xf32>, vector<2x32x8xf32>, vector<2x32x8xf32> -> vector<2x32x8xf32>
    "tpu.trace_stop"() : () -> ()
    %262 = vector.extract_strided_slice %261 {offsets = [0, 0, 0], sizes = [2, 8, 8], strides = [1, 1, 1]} : vector<2x32x8xf32> to vector<2x8x8xf32>
    %263 = vector.shape_cast %262 : vector<2x8x8xf32> to vector<16x8xf32>
    %c1_203 = arith.constant 1 : index
    %c0_204 = arith.constant 0 : index
    %c0_205 = arith.constant 0 : index
    %c0_206 = arith.constant 0 : index
    %264 = vector.load %arg8[%c1_203, %c0_204, %c0_205, %c0_206] : memref<2x4x8x32xf32, #tpu.memory_space<vmem>>, vector<1x1x8x32xf32>
    %265 = vector.shape_cast %264 : vector<1x1x8x32xf32> to vector<8x32xf32>
    %cst_207 = arith.constant dense<0.000000e+00> : vector<16x32xf32>
    %266 = tpu.matmul %263, %265, %cst_207 {dimension_numbers = #tpu.dot_dimension_numbers<[1], [0], [0], [1], [0, 0, 1, 1], [], []>} : vector<16x8xf32>, vector<8x32xf32>, vector<16x32xf32> -> vector<16x32xf32>
    %267 = vector.extract_strided_slice %261 {offsets = [0, 8, 0], sizes = [2, 8, 8], strides = [1, 1, 1]} : vector<2x32x8xf32> to vector<2x8x8xf32>
    %268 = vector.shape_cast %267 : vector<2x8x8xf32> to vector<16x8xf32>
    %c1_208 = arith.constant 1 : index
    %c1_209 = arith.constant 1 : index
    %c0_210 = arith.constant 0 : index
    %c0_211 = arith.constant 0 : index
    %269 = vector.load %arg8[%c1_208, %c1_209, %c0_210, %c0_211] : memref<2x4x8x32xf32, #tpu.memory_space<vmem>>, vector<1x1x8x32xf32>
    %270 = vector.shape_cast %269 : vector<1x1x8x32xf32> to vector<8x32xf32>
    %cst_212 = arith.constant dense<0.000000e+00> : vector<16x32xf32>
    %271 = tpu.matmul %268, %270, %cst_212 {dimension_numbers = #tpu.dot_dimension_numbers<[1], [0], [0], [1], [0, 0, 1, 1], [], []>} : vector<16x8xf32>, vector<8x32xf32>, vector<16x32xf32> -> vector<16x32xf32>
    %272 = arith.addf %266, %271 : vector<16x32xf32>
    %273 = vector.extract_strided_slice %261 {offsets = [0, 16, 0], sizes = [2, 8, 8], strides = [1, 1, 1]} : vector<2x32x8xf32> to vector<2x8x8xf32>
    %274 = vector.shape_cast %273 : vector<2x8x8xf32> to vector<16x8xf32>
    %c1_213 = arith.constant 1 : index
    %c2_214 = arith.constant 2 : index
    %c0_215 = arith.constant 0 : index
    %c0_216 = arith.constant 0 : index
    %275 = vector.load %arg8[%c1_213, %c2_214, %c0_215, %c0_216] : memref<2x4x8x32xf32, #tpu.memory_space<vmem>>, vector<1x1x8x32xf32>
    %276 = vector.shape_cast %275 : vector<1x1x8x32xf32> to vector<8x32xf32>
    %cst_217 = arith.constant dense<0.000000e+00> : vector<16x32xf32>
    %277 = tpu.matmul %274, %276, %cst_217 {dimension_numbers = #tpu.dot_dimension_numbers<[1], [0], [0], [1], [0, 0, 1, 1], [], []>} : vector<16x8xf32>, vector<8x32xf32>, vector<16x32xf32> -> vector<16x32xf32>
    %278 = arith.addf %272, %277 : vector<16x32xf32>
    %279 = vector.extract_strided_slice %261 {offsets = [0, 24, 0], sizes = [2, 8, 8], strides = [1, 1, 1]} : vector<2x32x8xf32> to vector<2x8x8xf32>
    %280 = vector.shape_cast %279 : vector<2x8x8xf32> to vector<16x8xf32>
    %c1_218 = arith.constant 1 : index
    %c3_219 = arith.constant 3 : index
    %c0_220 = arith.constant 0 : index
    %c0_221 = arith.constant 0 : index
    %281 = vector.load %arg8[%c1_218, %c3_219, %c0_220, %c0_221] : memref<2x4x8x32xf32, #tpu.memory_space<vmem>>, vector<1x1x8x32xf32>
    %282 = vector.shape_cast %281 : vector<1x1x8x32xf32> to vector<8x32xf32>
    %cst_222 = arith.constant dense<0.000000e+00> : vector<16x32xf32>
    %283 = tpu.matmul %280, %282, %cst_222 {dimension_numbers = #tpu.dot_dimension_numbers<[1], [0], [0], [1], [0, 0, 1, 1], [], []>} : vector<16x8xf32>, vector<8x32xf32>, vector<16x32xf32> -> vector<16x32xf32>
    %284 = arith.addf %278, %283 : vector<16x32xf32>
    %c1_223 = arith.constant 1 : index
    %c0_224 = arith.constant 0 : index
    %c0_225 = arith.constant 0 : index
    %285 = vector.load %arg9[%c1_223, %c0_224, %c0_225] : memref<2x1x32xf32, #tpu.memory_space<vmem>>, vector<1x1x32xf32>
    %286 = vector.shape_cast %285 : vector<1x1x32xf32> to vector<1x32xf32>
    %287 = vector.broadcast %286 : vector<1x32xf32> to vector<16x32xf32>
    %288 = arith.addf %284, %287 : vector<16x32xf32>
    %289 = vector.broadcast %2 : vector<16x1xf32> to vector<16x32xf32>
    %290 = arith.mulf %288, %289 : vector<16x32xf32>
    %291 = arith.addf %171, %290 : vector<16x32xf32>
    %c1_226 = arith.constant 1 : index
    %c0_227 = arith.constant 0 : index
    %c0_228 = arith.constant 0 : index
    %292 = vector.load %arg10[%c1_226, %c0_227, %c0_228] : memref<2x1x32xf32, #tpu.memory_space<vmem>>, vector<1x1x32xf32>
    %293 = vector.shape_cast %292 : vector<1x1x32xf32> to vector<1x32xf32>
    %c1_229 = arith.constant 1 : index
    %c0_230 = arith.constant 0 : index
    %c0_231 = arith.constant 0 : index
    %294 = vector.load %arg11[%c1_229, %c0_230, %c0_231] : memref<2x1x32xf32, #tpu.memory_space<vmem>>, vector<1x1x32xf32>
    %295 = vector.shape_cast %294 : vector<1x1x32xf32> to vector<1x32xf32>
    %cst_232 = arith.constant dense<0.000000e+00> : vector<16xf32>
    %296 = vector.multi_reduction <add>, %291, %cst_232 [1] : vector<16x32xf32> to vector<16xf32>
    %297 = vector.shape_cast %296 : vector<16xf32> to vector<16x1xf32>
    %cst_233 = arith.constant 3.200000e+01 : f32
    %298 = vector.broadcast %cst_233 : f32 to vector<16x1xf32>
    %299 = arith.divf %297, %298 : vector<16x1xf32>
    %300 = vector.broadcast %299 : vector<16x1xf32> to vector<16x32xf32>
    %301 = arith.subf %291, %300 : vector<16x32xf32>
    %302 = arith.mulf %301, %301 : vector<16x32xf32>
    %cst_234 = arith.constant dense<0.000000e+00> : vector<16xf32>
    %303 = vector.multi_reduction <add>, %302, %cst_234 [1] : vector<16x32xf32> to vector<16xf32>
    %304 = vector.shape_cast %303 : vector<16xf32> to vector<16x1xf32>
    %cst_235 = arith.constant 3.200000e+01 : f32
    %305 = vector.broadcast %cst_235 : f32 to vector<16x1xf32>
    %306 = arith.divf %304, %305 : vector<16x1xf32>
    %307 = vector.broadcast %299 : vector<16x1xf32> to vector<16x32xf32>
    %308 = arith.subf %291, %307 : vector<16x32xf32>
    %cst_236 = arith.constant 9.99999974E-6 : f32
    %309 = vector.broadcast %cst_236 : f32 to vector<16x1xf32>
    %310 = arith.addf %306, %309 : vector<16x1xf32>
    %311 = math.rsqrt %310 : vector<16x1xf32>
    %312 = vector.broadcast %311 : vector<16x1xf32> to vector<16x32xf32>
    %313 = arith.mulf %308, %312 : vector<16x32xf32>
    %314 = vector.broadcast %293 : vector<1x32xf32> to vector<16x32xf32>
    %315 = arith.mulf %313, %314 : vector<16x32xf32>
    %316 = vector.broadcast %295 : vector<1x32xf32> to vector<16x32xf32>
    %317 = arith.addf %315, %316 : vector<16x32xf32>
    %c1_237 = arith.constant 1 : index
    %c0_238 = arith.constant 0 : index
    %c0_239 = arith.constant 0 : index
    %318 = vector.load %arg12[%c1_237, %c0_238, %c0_239] : memref<2x32x64xf32, #tpu.memory_space<vmem>>, vector<1x32x64xf32>
    %319 = vector.shape_cast %318 : vector<1x32x64xf32> to vector<32x64xf32>
    %cst_240 = arith.constant dense<0.000000e+00> : vector<16x64xf32>
    %320 = tpu.matmul %317, %319, %cst_240 {dimension_numbers = #tpu.dot_dimension_numbers<[1], [0], [0], [1], [0, 0, 1, 1], [], []>} : vector<16x32xf32>, vector<32x64xf32>, vector<16x64xf32> -> vector<16x64xf32>
    %c1_241 = arith.constant 1 : index
    %c0_242 = arith.constant 0 : index
    %c0_243 = arith.constant 0 : index
    %321 = vector.load %arg13[%c1_241, %c0_242, %c0_243] : memref<2x1x64xf32, #tpu.memory_space<vmem>>, vector<1x1x64xf32>
    %322 = vector.shape_cast %321 : vector<1x1x64xf32> to vector<1x64xf32>
    %323 = vector.broadcast %322 : vector<1x64xf32> to vector<16x64xf32>
    %324 = arith.addf %320, %323 : vector<16x64xf32>
    %cst_244 = arith.constant 5.000000e-01 : f32
    %325 = vector.broadcast %cst_244 : f32 to vector<16x64xf32>
    %326 = arith.mulf %324, %325 : vector<16x64xf32>
    %cst_245 = arith.constant 1.41421354 : f32
    %327 = vector.broadcast %cst_245 : f32 to vector<16x64xf32>
    %328 = arith.divf %324, %327 : vector<16x64xf32>
    %329 = math.erf %328 : vector<16x64xf32>
    %cst_246 = arith.constant 1.000000e+00 : f32
    %330 = vector.broadcast %cst_246 : f32 to vector<16x64xf32>
    %331 = arith.addf %330, %329 : vector<16x64xf32>
    %332 = arith.mulf %326, %331 : vector<16x64xf32>
    %c1_247 = arith.constant 1 : index
    %c0_248 = arith.constant 0 : index
    %c0_249 = arith.constant 0 : index
    %333 = vector.load %arg14[%c1_247, %c0_248, %c0_249] : memref<2x64x32xf32, #tpu.memory_space<vmem>>, vector<1x64x32xf32>
    %334 = vector.shape_cast %333 : vector<1x64x32xf32> to vector<64x32xf32>
    %cst_250 = arith.constant dense<0.000000e+00> : vector<16x32xf32>
    %335 = tpu.matmul %332, %334, %cst_250 {dimension_numbers = #tpu.dot_dimension_numbers<[1], [0], [0], [1], [0, 0, 1, 1], [], []>} : vector<16x64xf32>, vector<64x32xf32>, vector<16x32xf32> -> vector<16x32xf32>
    %336 = arith.addf %291, %335 : vector<16x32xf32>
    %c1_251 = arith.constant 1 : index
    %c0_252 = arith.constant 0 : index
    %c0_253 = arith.constant 0 : index
    %337 = vector.load %arg15[%c1_251, %c0_252, %c0_253] : memref<2x1x32xf32, #tpu.memory_space<vmem>>, vector<1x1x32xf32>
    %338 = vector.shape_cast %337 : vector<1x1x32xf32> to vector<1x32xf32>
    %339 = vector.broadcast %338 : vector<1x32xf32> to vector<16x32xf32>
    %340 = arith.addf %336, %339 : vector<16x32xf32>
    %c0_254 = arith.constant 0 : index
    %c0_255 = arith.constant 0 : index
    %341 = vector.load %arg16[%c0_254, %c0_255] : memref<1x32xf32, #tpu.memory_space<vmem>>, vector<1x32xf32>
    %c0_256 = arith.constant 0 : index
    %c0_257 = arith.constant 0 : index
    %342 = vector.load %arg17[%c0_256, %c0_257] : memref<1x32xf32, #tpu.memory_space<vmem>>, vector<1x32xf32>
    %cst_258 = arith.constant dense<0.000000e+00> : vector<16xf32>
    %343 = vector.multi_reduction <add>, %340, %cst_258 [1] : vector<16x32xf32> to vector<16xf32>
    %344 = vector.shape_cast %343 : vector<16xf32> to vector<16x1xf32>
    %cst_259 = arith.constant 3.200000e+01 : f32
    %345 = vector.broadcast %cst_259 : f32 to vector<16x1xf32>
    %346 = arith.divf %344, %345 : vector<16x1xf32>
    %347 = vector.broadcast %346 : vector<16x1xf32> to vector<16x32xf32>
    %348 = arith.subf %340, %347 : vector<16x32xf32>
    %349 = arith.mulf %348, %348 : vector<16x32xf32>
    %cst_260 = arith.constant dense<0.000000e+00> : vector<16xf32>
    %350 = vector.multi_reduction <add>, %349, %cst_260 [1] : vector<16x32xf32> to vector<16xf32>
    %351 = vector.shape_cast %350 : vector<16xf32> to vector<16x1xf32>
    %cst_261 = arith.constant 3.200000e+01 : f32
    %352 = vector.broadcast %cst_261 : f32 to vector<16x1xf32>
    %353 = arith.divf %351, %352 : vector<16x1xf32>
    %354 = vector.broadcast %346 : vector<16x1xf32> to vector<16x32xf32>
    %355 = arith.subf %340, %354 : vector<16x32xf32>
    %cst_262 = arith.constant 9.99999974E-6 : f32
    %356 = vector.broadcast %cst_262 : f32 to vector<16x1xf32>
    %357 = arith.addf %353, %356 : vector<16x1xf32>
    %358 = math.rsqrt %357 : vector<16x1xf32>
    %359 = vector.broadcast %358 : vector<16x1xf32> to vector<16x32xf32>
    %360 = arith.mulf %355, %359 : vector<16x32xf32>
    %361 = vector.broadcast %341 : vector<1x32xf32> to vector<16x32xf32>
    %362 = arith.mulf %360, %361 : vector<16x32xf32>
    %363 = vector.broadcast %342 : vector<1x32xf32> to vector<16x32xf32>
    %364 = arith.addf %362, %363 : vector<16x32xf32>
    %c0_263 = arith.constant 0 : index
    %c0_264 = arith.constant 0 : index
    %365 = vector.load %arg18[%c0_263, %c0_264] : memref<32x128xf32, #tpu.memory_space<vmem>>, vector<32x128xf32>
    %cst_265 = arith.constant dense<0.000000e+00> : vector<16x128xf32>
    %366 = tpu.matmul %364, %365, %cst_265 {dimension_numbers = #tpu.dot_dimension_numbers<[1], [0], [0], [1], [0, 0, 1, 1], [], []>} : vector<16x32xf32>, vector<32x128xf32>, vector<16x128xf32> -> vector<16x128xf32>
    %c0_266 = arith.constant 0 : index
    %c0_267 = arith.constant 0 : index
    %367 = vector.load %arg19[%c0_266, %c0_267] : memref<1x128xf32, #tpu.memory_space<vmem>>, vector<1x128xf32>
    %368 = vector.broadcast %367 : vector<1x128xf32> to vector<16x128xf32>
    %369 = arith.addf %366, %368 : vector<16x128xf32>
    %c0_268 = arith.constant 0 : index
    %c0_269 = arith.constant 0 : index
    %370 = vector.load %arg20[%c0_268, %c0_269] : memref<16x128xf32, #tpu.memory_space<vmem>>, vector<16x128xf32>
    tpu.vector_store %arg20[%c0_268, %c0_269], %369 {strides = array<i32>} : memref<16x128xf32, #tpu.memory_space<vmem>>, vector<16x128xf32>,
    return
  }
}

</mosaic_0001>

<bundles_post_ra>
// kernel: gpt_forward.1
= control target key start
LH: loop header
LB: loop body
LE: loop exit
PB: predicated region body
PF: predicated region fallthrough
CT: control target
= control target key end

     0   :  { %s3635_s0 = inlined_call_operand.vmem [shape: f32[16,32], index: 0, kind: input, shape index: {}]   ;;  %s3636_s1 = inlined_call_operand.vmem [shape: f32[2,32,32], index: 1, kind: input, shape index: {}]   ;;  %s3637_s2 = inlined_call_operand.vmem [shape: f32[16,1], index: 2, kind: input, shape index: {}]   ;;  %s3638_s3 = inlined_call_operand.vmem [shape: f32[2,1,32], index: 3, kind: input, shape index: {}]   ;;  %s3639_s4 = inlined_call_operand.vmem [shape: f32[2,1,32], index: 4, kind: input, shape index: {}]   ;;  %s3640_s5 = inlined_call_operand.vmem [shape: f32[2,4,32,8], index: 5, kind: input, shape index: {}]   ;;  %s3641_s6 = inlined_call_operand.vmem [shape: f32[2,4,32,8], index: 6, kind: input, shape index: {}]   ;;  %s3642_s7 = inlined_call_operand.vmem [shape: f32[2,4,32,8], index: 7, kind: input, shape index: {}]   ;;  %s3643_s8 = inlined_call_operand.vmem [shape: f32[2,4,8,32], index: 8, kind: input, shape index: {}]   ;;  %s3644_s9 = inlined_call_operand.vmem [shape: f32[2,1,32], index: 9, kind: input, shape index: {}]   ;;  %s3645_s10 = inlined_call_operand.vmem [shape: f32[2,1,32], index: 10, kind: input, shape index: {}]   ;;  %s3646_s11 = inlined_call_operand.vmem [shape: f32[2,1,32], index: 11, kind: input, shape index: {}]   ;;  %s3647_s12 = inlined_call_operand.vmem [shape: f32[2,32,64], index: 12, kind: input, shape index: {}]   ;;  %s3648_s13 = inlined_call_operand.vmem [shape: f32[2,1,64], index: 13, kind: input, shape index: {}]   ;;  %s3649_s14 = inlined_call_operand.vmem [shape: f32[2,64,32], index: 14, kind: input, shape index: {}]   ;;  %s3650_s15 = inlined_call_operand.vmem [shape: f32[2,1,32], index: 15, kind: input, shape index: {}]   ;;  %s3651_s16 = inlined_call_operand.vmem [shape: f32[1,32], index: 16, kind: input, shape index: {}]   ;;  %s3652_s17 = inlined_call_operand.vmem [shape: f32[1,32], index: 17, kind: input, shape index: {}]   ;;  %s3653_s18 = inlined_call_operand.vmem [shape: f32[32,128], index: 18, kind: input, shape index: {}]   ;;  %s3654_s19 = inlined_call_operand.vmem [shape: f32[1,128], index: 19, kind: input, shape index: {}]   ;;  %s3655_s20 = inlined_call_operand.hbm [shape: f32[16,128], index: 20, kind: output, shape index: {}]  }
   0x1   :  { %3661 = sst [smem:[#allocation5_spill]] %s3635_s0 }
   0x2   :  { %3662 = sst [smem:[#allocation6_spill]] %s3636_s1 }
   0x3   :  { %3663 = sst [smem:[#allocation7_spill]] %s3637_s2 }
   0x4   :  { %3664 = sst [smem:[#allocation8_spill]] %s3638_s3 }
   0x5   :  { %3665 = sst [smem:[#allocation9_spill]] %s3639_s4 }
   0x6   :  { %s3666_s23 = sld [smem:[#allocation5_spill]]  ;;  %vm80_vm0 = vcmask 261120  }
   0xc   :  { %v2808_v0 = vld [vmem:[%s3666_s23] sm:$0xff]  ;;  %v2815_v2 = vld [vmem:[%s3666_s23 + $0x8] sm:$0xff] }
   0xd   :  { %v81_v1 = vsel %vm80_vm0, %v2808_v0, 0.0 }
   0xe   :  { %82 = vadd.xlane.f32.xlu0 %v81_v1 }
   0xf   :  { %25 = vsyncpa [#allocation3], 0  ;;  %v84_v3 = vsel %vm80_vm0, %v2815_v2, 0.0  ;;  %v2694_v4 = vmov 32.0   ;;  %v145_v21 = vld [vmem:[%s3640_s5 + $0x18] sm:$0xff]  ;;  %v144_v24 = vld [vmem:[%s3640_s5 + $0x10] sm:$0xff] }
  0x10   :  { %2564 = vrcp.f32 %v2694_v4  ;;  %v2310_v22 = vld [vmem:[%s3640_s5 + $0x58] sm:$0xff]  ;;  %164 = vmatpush.msra.mxu0 %v145_v21  ;;  %v2309_v25 = vld [vmem:[%s3640_s5 + $0x50] sm:$0xff]  ;;  %2535 = vmatpush.msra.mxu1 %v145_v21  ;;  %v143_v27 = vld [vmem:[%s3640_s5 + $0x8] sm:$0xff]  ;;  %s3667_s24 = sld [smem:[#allocation8_spill]]  ;;  %vm481_vm8 = vcmask 64512   ;;  %s2697_s22 = smov [#allocation2]  }
  0x11   :  { %v2316_v23 = vld [vmem:[%s3640_s5 + $0x78] sm:$0xff]  ;;  %220 = vmatpush.msra.mxu2 %v2310_v22  ;;  %v2315_v26 = vld [vmem:[%s3640_s5 + $0x70] sm:$0xff]  ;;  %v2308_v28 = vld [vmem:[%s3640_s5 + $0x48] sm:$0xff]  ;;  %s3668_s3 = sld [smem:[#allocation9_spill]]  ;;  %s2285_s23 = sshll.u32 %s2697_s22, 4  ;;  %s2286_s23 = int_to_ptr.vmem [resolvable:$true] %s2285_s23 }
  0x12   :  { %248 = vmatpush.msra.mxu3 %v2316_v23  ;;  %165 = vmatpush.msra.mxu0 %v144_v24  ;;  %v2314_v29 = vld [vmem:[%s3640_s5 + $0x68] sm:$0xff]  ;;  %v142_v30 = vld [vmem:[%s3640_s5] sm:$0xff]  ;;  %v262_v33 = vld [vmem:[%s3641_s6 + $0x18] sm:$0xff]  ;;  %s3669_s4 = sld [smem:[#allocation6_spill]]  ;;  %s2699_s25 = smov 8  }
  0x13   :  { %221 = vmatpush.msra.mxu2 %v2309_v25  ;;  %2536 = vmatpush.msra.mxu1 %v144_v24  ;;  %v2307_v31 = vld [vmem:[%s3640_s5 + $0x40] sm:$0xff]  ;;  %v261_v35 = vld [vmem:[%s3641_s6 + $0x10] sm:$0xff]  ;;  %v260_v37 = vld [vmem:[%s3641_s6 + $0x8] sm:$0xff]  ;;  %s3670_s29 = sld [smem:[#allocation7_spill]] }
  0x14   :  { %249 = vmatpush.msra.mxu3 %v2315_v26  ;;  %166 = vmatpush.msra.mxu0 %v143_v27  ;;  %v2313_v32 = vld [vmem:[%s3640_s5 + $0x60] sm:$0xff]  ;;  %v2336_v39 = vld [vmem:[%s3641_s6 + $0x78] sm:$0xff]  ;;  %v2335_v42 = vld [vmem:[%s3641_s6 + $0x70] sm:$0xff] }
  0x15   :  { %222 = vmatpush.msra.mxu2 %v2308_v28  ;;  %2537 = vmatpush.msra.mxu1 %v143_v27  ;;  %v259_v40 = vld [vmem:[%s3641_s6] sm:$0xff]  ;;  %v2330_v41 = vld [vmem:[%s3641_s6 + $0x58] sm:$0xff]  ;;  %v2303_v44 = vld [vmem:[%s3640_s5 + $0x30] sm:$0xff] }
  0x16   :  { %85 = vadd.xlane.f32.xlu0 %v84_v3  ;;  %v2565_v5 = vpop.eup %2564  ;;  %250 = vmatpush.msra.mxu3 %v2314_v29  ;;  %v2304_v43 = vld [vmem:[%s3640_s5 + $0x38] sm:$0xff]  ;;  %v2329_v45 = vld [vmem:[%s3641_s6 + $0x50] sm:$0xff]  ;;  %v2334_v46 = vld [vmem:[%s3641_s6 + $0x68] sm:$0xff] }
  0x17   :  { %v88_v6 = vmul.f32 32.0, %v2565_v5  ;;  %vm92_vm1 = vweird.f32 %v2565_v5  ;;  %167 = vmatpush.msra.mxu0 %v142_v30  ;;  %223 = vmatpush.msra.mxu2 %v2307_v31  ;;  %v2328_v47 = vld [vmem:[%s3641_s6 + $0x48] sm:$0xff]  ;;  %v2327_v50 = vld [vmem:[%s3641_s6 + $0x40] sm:$0xff]  ;;  %v2324_v26 = vld [vmem:[%s3641_s6 + $0x38] sm:$0xff] }
  0x18   :  { %251 = vmatpush.msra.mxu3 %v2313_v32  ;;  %2538 = vmatpush.msra.mxu1 %v142_v30  ;;  %v2302_v49 = vld [vmem:[%s3640_s5 + $0x28] sm:$0xff]  ;;  %v2333_v51 = vld [vmem:[%s3641_s6 + $0x60] sm:$0xff]  ;;  %v2323_v29 = vld [vmem:[%s3641_s6 + $0x30] sm:$0xff] }
  0x19   :  { %v89_v7 = vsub.f32 1.0, %v88_v6  ;;  %275 = vmatpush.msrb.mxu0 %v262_v33  ;;  %331 = vmatpush.msrb.mxu2 %v2330_v41  ;;  %v2301_v53 = vld [vmem:[%s3640_s5 + $0x20] sm:$0xff]  ;;  %v371_v21 = vld [vmem:[%s3642_s7 + $0x8] sm:$0xff]  ;;  %v2344_v32 = vld [vmem:[%s3642_s7 + $0x38] sm:$0xff] }
  0x1a   :  { %359 = vmatpush.msrb.mxu3 %v2336_v39  ;;  %192 = vmatpush.msrb.mxu1 %v2304_v43  ;;  %v2547_v63 = vld [vmem:[%s3667_s24] ss:$0 sm:$0xff]  ;;  %v2348_v22 = vld [vmem:[%s3642_s7 + $0x48] sm:$0xff]  ;;  %v2343_v33 = vld [vmem:[%s3642_s7 + $0x30] sm:$0xff] }
  0x1b   :  { %v90_v8 = vmul.f32 %v2565_v5, %v89_v7  ;;  %276 = vmatpush.msrb.mxu0 %v261_v35  ;;  %332 = vmatpush.msrb.mxu2 %v2329_v45  ;;  %v2548_v4 = vld [vmem:[%s3668_s3] ss:$0 sm:$0xff]  ;;  %v2354_v23 = vld [vmem:[%s3642_s7 + $0x68] sm:$0xff] }
  0x1c   :  { %360 = vmatpush.msrb.mxu3 %v2335_v42  ;;  %193 = vmatpush.msrb.mxu1 %v2303_v44  ;;  %v2347_v27 = vld [vmem:[%s3642_s7 + $0x40] sm:$0xff]  ;;  %v2322_v30 = vld [vmem:[%s3641_s6 + $0x28] sm:$0xff] }
  0x1d   :  { %v91_v9 = vadd.f32 %v2565_v5, %v90_v8  ;;  %277 = vmatpush.msrb.mxu0 %v260_v37  ;;  %333 = vmatpush.msrb.mxu2 %v2328_v47  ;;  %v2353_v28 = vld [vmem:[%s3642_s7 + $0x60] sm:$0xff] }
  0x1e   :  { %361 = vmatpush.msrb.mxu3 %v2334_v46  ;;  %194 = vmatpush.msrb.mxu1 %v2302_v49  ;;  %v2321_v31 = vld [vmem:[%s3641_s6 + $0x20] sm:$0xff] }
  0x1f   :  { %v2819_v10 = vsel %vm92_vm1, %v2565_v5, %v91_v9  ;;  %278 = vmatpush.msrb.mxu0 %v259_v40  ;;  %334 = vmatpush.msrb.mxu2 %v2327_v50  ;;  %v2341_v35 = vld [vmem:[%s3642_s7 + $0x20] sm:$0xff] }
  0x20   :  { %362 = vmatpush.msrb.mxu3 %v2333_v51  ;;  %195 = vmatpush.msrb.mxu1 %v2301_v53 }
  0x81   :  { %v83_v11 = vpop.xlane.xlu0 %82 }
  0x82   :  { %v94_v12 = vmul.f32 %v2819_v10, %v83_v11  ;;  %v373_v11 = vld [vmem:[%s3642_s7 + $0x18] sm:$0xff] }
  0x84   :  { %v2823_v13 = vsub.f32 %v2808_v0, %v94_v12 }
  0x86   :  { %v98_v14 = vmul.f32 %v2823_v13, %v2823_v13 }
  0x88   :  { %v100_v15 = vsel %vm80_vm0, %v98_v14, 0.0  ;;  %v2350_v14 = vld [vmem:[%s3642_s7 + $0x58] sm:$0xff] }
  0x89   :  { %101 = vadd.xlane.f32.xlu1 %v100_v15  ;;  %v86_v16 = vpop.xlane.xlu0 %85  ;;  %v372_v15 = vld [vmem:[%s3642_s7 + $0x10] sm:$0xff] }
  0x8a   :  { %v95_v17 = vmul.f32 %v2819_v10, %v86_v16 }
  0x8c   :  { %v2830_v18 = vsub.f32 %v2815_v2, %v95_v17  ;;  %v2349_v17 = vld [vmem:[%s3642_s7 + $0x50] sm:$0xff] }
  0x8e   :  { %v99_v19 = vmul.f32 %v2830_v18, %v2830_v18 }
  0x90   :  { %v103_v20 = vsel %vm80_vm0, %v99_v19, 0.0  ;;  %v2355_v19 = vld [vmem:[%s3642_s7 + $0x70] sm:$0xff] }
  0x91   :  { %104 = vadd.xlane.f32.xlu1 %v103_v20 }
  0xfc   :  { %v102_v34 = vpop.xlane.xlu1 %101 }
  0xfd   :  { %v106_v36 = vmul.f32 %v102_v34, %v2819_v10  ;;  %v2342_v34 = vld [vmem:[%s3642_s7 + $0x28] sm:$0xff] }
  0xff   :  { %v108_v38 = vadd.f32 1e-05, %v106_v36 }
 0x101   :  { %2566 = vrsqrt.f32 %v108_v38  ;;  %vm116_vm3 = vweird.f32 %v108_v38 }
 0x104   :  { %v105_v48 = vpop.xlane.xlu1 %104 }
 0x105   :  { %v107_v52 = vmul.f32 %v105_v48, %v2819_v10 }
 0x107   :  { %v2567_v54 = vpop.eup %2566  ;;  %v109_v55 = vadd.f32 1e-05, %v107_v52 }
 0x108   :  { %v111_v56 = vmul.f32 %v2567_v54, %v108_v38  ;;  %vm117_vm2 = vweird.f32 %v2567_v54 }
 0x109   :  { %2568 = vrsqrt.f32 %v109_v55  ;;  %vm118_vm4 = vmor %vm116_vm3, %vm117_vm2  ;;  %vm126_vm6 = vweird.f32 %v109_v55 }
 0x10a   :  { %v112_v57 = vmul.f32 %v2567_v54, %v111_v56 }
 0x10c   :  { %v113_v58 = vmul.f32 0.5, %v112_v57 }
 0x10e   :  { %v114_v59 = vsub.f32 1.5, %v113_v58 }
 0x10f   :  { %v2569_v60 = vpop.eup %2568 }
 0x110   :  { %v115_v61 = vmul.f32 %v2567_v54, %v114_v59  ;;  %v121_v62 = vmul.f32 %v2569_v60, %v109_v55  ;;  %vm127_vm5 = vweird.f32 %v2569_v60 }
 0x111   :  { %vm128_vm7 = vmor %vm126_vm6, %vm127_vm5 }
 0x112   :  { %v119_v1 = vsel %vm118_vm4, %v2567_v54, %v115_v61  ;;  %v122_v3 = vmul.f32 %v2569_v60, %v121_v62 }
 0x113   :  { %v130_v5 = vmul.f32 %v119_v1, %v2823_v13  ;;  %v2356_v13 = vld [vmem:[%s3642_s7 + $0x78] sm:$0xff]  ;;  %v69_v1 = vld [vmem:[%s3669_s4 + $0x8] sm:$0xff] }
 0x114   :  { %v123_v6 = vmul.f32 0.5, %v122_v3  ;;  %v72_v3 = vld [vmem:[%s3669_s4 + $0x20] sm:$0xff] }
 0x115   :  { %v135_v7 = vmul.f32 %v2547_v63, %v130_v5 }
 0x116   :  { %v124_v8 = vsub.f32 1.5, %v123_v6 }
 0x117   :  { %v2928_v9 = vadd.f32 %v2548_v4, %v135_v7 }
 0x118   :  { %v125_v12 = vmul.f32 %v2569_v60, %v124_v8 }
 0x119   :  { %2299 = vmatmul.msk.f32.vlgmr.msra.gmra.mxu0 %vm80_vm0, %v2928_v9  ;;  %2311 = vmatmul.msk.f32.vlgmr.msra.gmra.mxu2 %vm80_vm0, %v2928_v9 }
 0x11a   :  { %v129_v16 = vsel %vm128_vm7, %v2569_v60, %v125_v12  ;;  %2317 = vmatmul.msk.f32.vlgmr.msra.gmra.mxu3 %vm80_vm0, %v2928_v9  ;;  %386 = vmatpush.msra.mxu0 %v373_v11  ;;  %v68_v60 = vld [vmem:[%s3669_s4] sm:$0xff]  ;;  %v70_v11 = vld [vmem:[%s3669_s4 + $0x10] sm:$0xff]  ;;  %v73_v12 = vld [vmem:[%s3669_s4 + $0x28] sm:$0xff]  ;;  %vm1101_vm7 = vcmask 523264  }
 0x11b   :  { %v131_v20 = vmul.f32 %v129_v16, %v2830_v18  ;;  %442 = vmatpush.msra.mxu2 %v2350_v14  ;;  %470 = vmatpush.msra.mxu3 %v2356_v13  ;;  %v370_v18 = vld [vmem:[%s3642_s7] sm:$0xff] }
 0x11c   :  { %387 = vmatpush.msra.mxu0 %v372_v15 }
 0x11d   :  { %v136_v24 = vmul.f32 %v2547_v63, %v131_v20  ;;  %443 = vmatpush.msra.mxu2 %v2349_v17  ;;  %471 = vmatpush.msra.mxu3 %v2355_v19  ;;  %v71_v20 = vld [vmem:[%s3669_s4 + $0x18] sm:$0xff] }
 0x11e   :  { %388 = vmatpush.msra.mxu0 %v371_v21  ;;  %v74_v21 = vld [vmem:[%s3669_s4 + $0x30] sm:$0xff] }
 0x11f   :  { %v141_v25 = vadd.f32 %v2548_v4, %v136_v24  ;;  %444 = vmatpush.msra.mxu2 %v2348_v22  ;;  %472 = vmatpush.msra.mxu3 %v2354_v23 }
 0x120   :  { %389 = vmatpush.msra.mxu0 %v370_v18 }
 0x121   :  { %2300 = vmatmul.msk.f32.vlgmr.msra.gmra.mxu1 %vm80_vm0, %v141_v25  ;;  %2312 = vmatmul.msk.f32.gmra.mxu2 %vm80_vm0, %v141_v25 }
 0x122   :  { %2318 = vmatmul.msk.f32.gmra.mxu3 %vm80_vm0, %v141_v25  ;;  %2319 = vmatmul.msk.f32.vlgmr.msrb.gmra.mxu0 %vm80_vm0, %v2928_v9 }
 0x123   :  { %303 = vmatpush.msra.mxu1 %v2324_v26  ;;  %445 = vmatpush.msra.mxu2 %v2347_v27  ;;  %v75_v27 = vld [vmem:[%s3669_s4 + $0x38] sm:$0xff] }
 0x124   :  { %473 = vmatpush.msra.mxu3 %v2353_v28 }
 0x125   :  { %304 = vmatpush.msra.mxu1 %v2323_v29 }
 0x127   :  { %305 = vmatpush.msra.mxu1 %v2322_v30 }
 0x129   :  { %2305 = vmatmul.msk.f32.vlgmr.msrb.gmra.mxu1 %vm80_vm0, %v2928_v9  ;;  %2331 = vmatmul.msk.f32.vlgmr.msrb.gmra.mxu2 %vm80_vm0, %v2928_v9 }
 0x12a   :  { %2320 = vmatmul.msk.f32.gmra.mxu0 %vm80_vm0, %v141_v25  ;;  %2337 = vmatmul.msk.f32.vlgmr.msrb.gmra.mxu3 %vm80_vm0, %v2928_v9 }
 0x12b   :  { %306 = vmatpush.msra.mxu1 %v2321_v31 }
 0x12d   :  { %414 = vmatpush.msrb.mxu1 %v2344_v32 }
 0x12f   :  { %415 = vmatpush.msrb.mxu1 %v2343_v33 }
 0x131   :  { %416 = vmatpush.msrb.mxu1 %v2342_v34  ;;  %2332 = vmatmul.msk.f32.gmra.mxu2 %vm80_vm0, %v141_v25 }
 0x132   :  { %2306 = vmatmul.msk.f32.gmra.mxu1 %vm80_vm0, %v141_v25  ;;  %2338 = vmatmul.msk.f32.gmra.mxu3 %vm80_vm0, %v141_v25 }
 0x133   :  { %2339 = vmatmul.msk.f32.vlgmr.msra.gmra.mxu0 %vm80_vm0, %v2928_v9  ;;  %417 = vmatpush.msrb.mxu1 %v2341_v35 }
 0x139   :  { %2351 = vmatmul.msk.f32.vlgmr.msra.gmra.mxu2 %vm80_vm0, %v2928_v9 }
 0x13a   :  { %2325 = vmatmul.msk.f32.vlgmr.msra.gmra.mxu1 %vm80_vm0, %v2928_v9  ;;  %2357 = vmatmul.msk.f32.vlgmr.msra.gmra.mxu3 %vm80_vm0, %v2928_v9 }
 0x13b   :  { %2340 = vmatmul.msk.f32.gmra.mxu0 %vm80_vm0, %v141_v25 }
 0x141   :  { %2352 = vmatmul.msk.f32.gmra.mxu2 %vm80_vm0, %v141_v25 }
 0x142   :  { %2326 = vmatmul.msk.f32.gmra.mxu1 %vm80_vm0, %v141_v25  ;;  %2358 = vmatmul.msk.f32.gmra.mxu3 %vm80_vm0, %v141_v25 }
 0x14a   :  { %2345 = vmatmul.msk.f32.vlgmr.msrb.gmra.mxu1 %vm80_vm0, %v2928_v9 }
 0x152   :  { %2346 = vmatmul.msk.f32.gmra.mxu1 %vm80_vm0, %v141_v25 }
 0x196   :  { %v169_v42 = vpop.f32.mrf.mxu0 }
 0x19c   :  { %v225_v36 = vpop.f32.mrf.mxu2 }
 0x19d   :  { %v253_v37 = vpop.f32.mrf.mxu3 }
 0x19e   :  { %v172_v38 = vpop.f32.mrf.mxu1 }
 0x19f   :  { %v280_v46 = vpop.f32.mrf.mxu0 }
 0x1a4   :  { %v228_v39 = vpop.f32.mrf.mxu2 }
 0x1a5   :  { %v256_v40 = vpop.f32.mrf.mxu3 }
 0x1a6   :  { %v197_v41 = vpop.f32.mrf.mxu1 }
 0x1a7   :  { %v283_v50 = vpop.f32.mrf.mxu0 }
 0x1ac   :  { %v336_v43 = vpop.f32.mrf.mxu2 }
 0x1ad   :  { %v364_v44 = vpop.f32.mrf.mxu3 }
 0x1ae   :  { %2359 = vmatpush.xpose.msk.msrb.mxu0 %vm481_vm8, %v364_v44 }
 0x1af   :  { %v200_v45 = vpop.f32.mrf.mxu1 }
 0x1b0   :  { %v391_v55 = vpop.f32.mrf.mxu0 }
 0x1b2   :  { %2360 = vmatpush.xpose.msk.msrb.mxu0 %vm481_vm8, %v336_v43 }
 0x1b4   :  { %v339_v47 = vpop.f32.mrf.mxu2 }
 0x1b5   :  { %v367_v48 = vpop.f32.mrf.mxu3 }
 0x1b6   :  { %2367 = vmatpush.xpose.msk.msra.mxu1 %vm481_vm8, %v367_v48 }
 0x1b7   :  { %v308_v49 = vpop.f32.mrf.mxu1 }
 0x1b8   :  { %2361 = vmatpush.xpose.msk.msrb.mxu0 %vm481_vm8, %v308_v49  ;;  %v394_v59 = vpop.f32.mrf.mxu0 }
 0x1ba   :  { %2368 = vmatpush.xpose.msk.msra.mxu1 %vm481_vm8, %v339_v47 }
 0x1bc   :  { %2362 = vmatpush.xpose.msk.msrb.mxu0 %vm481_vm8, %v280_v46  ;;  %v447_v51 = vpop.f32.mrf.mxu2 }
 0x1bd   :  { %v475_v52 = vpop.f32.mrf.mxu3 }
 0x1be   :  { %700 = vmatpush.msrb.mxu2 %v475_v52 }
 0x1bf   :  { %v311_v53 = vpop.f32.mrf.mxu1  ;;  %2363 = vmatmul.msk.f32.vlgmr.msrb.gmra.mxu0 %vm481_vm8, %v169_v42 }
 0x1c0   :  { %2369 = vmatpush.xpose.msk.msra.mxu1 %vm481_vm8, %v311_v53  ;;  %701 = vmatpush.msrb.mxu2 %v447_v51 }
 0x1c4   :  { %2370 = vmatpush.xpose.msk.msra.mxu1 %vm481_vm8, %v283_v50  ;;  %v450_v57 = vpop.f32.mrf.mxu2 }
 0x1c5   :  { %v478_v54 = vpop.f32.mrf.mxu3 }
 0x1c6   :  { %741 = vmatpush.msrb.mxu3 %v478_v54 }
 0x1c7   :  { %v419_v56 = vpop.f32.mrf.mxu1  ;;  %2364 = vmatmul.msk.f32.gmra.mxu0 %vm481_vm8, %v197_v41  ;;  %2371 = vmatmul.msk.f32.vlgmr.msra.gmra.mxu1 %vm481_vm8, %v172_v38 }
 0x1c8   :  { %702 = vmatpush.msrb.mxu2 %v419_v56  ;;  %742 = vmatpush.msrb.mxu3 %v450_v57 }
 0x1ca   :  { %703 = vmatpush.msrb.mxu2 %v391_v55 }
 0x1cf   :  { %v422_v58 = vpop.f32.mrf.mxu1  ;;  %2365 = vmatmul.msk.f32.gmra.mxu0 %vm481_vm8, %v225_v36  ;;  %2372 = vmatmul.msk.f32.gmra.mxu1 %vm481_vm8, %v200_v45 }
 0x1d0   :  { %743 = vmatpush.msrb.mxu3 %v422_v58 }
 0x1d2   :  { %744 = vmatpush.msrb.mxu3 %v394_v59 }
 0x1d7   :  { %2366 = vmatmul.msk.f32.gmra.mxu0 %vm481_vm8, %v253_v37  ;;  %2373 = vmatmul.msk.f32.gmra.mxu1 %vm481_vm8, %v228_v39 }
 0x1df   :  { %2374 = vmatmul.msk.f32.gmra.mxu1 %vm481_vm8, %v256_v40 }
 0x23c   :  { %v523_v61 = vpop.f32.mrf.mxu0 }
 0x23d   :  { %v524_v62 = vadd.f32 %v523_v61, %v68_v60 }
 0x23f   :  { %v588_v63 = vsel %vm80_vm0, %v524_v62, -inf }
 0x240   :  { %589 = vmax.xlane.f32.xlu2 %v588_v63 }
 0x244   :  { %v526_v4 = vpop.f32.mrf.mxu0  ;;  %v576_v6 = vpop.f32.mrf.mxu1 }
 0x245   :  { %v527_v5 = vadd.f32 %v526_v4, %v69_v1  ;;  %v577_v7 = vadd.f32 %v576_v6, %v72_v3 }
 0x247   :  { %v591_v8 = vsel %vm80_vm0, %v527_v5, -inf  ;;  %v600_v9 = vsel %vm80_vm0, %v577_v7, -inf }
 0x248   :  { %592 = vmax.xlane.f32.xlu2 %v591_v8  ;;  %601 = vmax.xlane.f32.xlu0 %v600_v9 }
 0x24c   :  { %v529_v14 = vpop.f32.mrf.mxu0  ;;  %v579_v15 = vpop.f32.mrf.mxu1 }
 0x24d   :  { %v530_v13 = vadd.f32 %v529_v14, %v70_v11  ;;  %v580_v16 = vadd.f32 %v579_v15, %v73_v12  ;;  %v2388_v15 = vld [vmem:[%s3643_s8 + $0x10] sm:$0xff] }
 0x24e   :  { %842 = vmatpush.msra.mxu2 %v2388_v15 }
 0x24f   :  { %v594_v17 = vsel %vm80_vm0, %v530_v13, -inf  ;;  %v603_v19 = vsel %vm80_vm0, %v580_v16, -inf }
 0x250   :  { %595 = vmax.xlane.f32.xlu1 %v594_v17  ;;  %604 = vmax.xlane.f32.xlu2 %v603_v19  ;;  %v2383_v17 = vld [vmem:[%s3643_s8 + $0x8] sm:$0xff]  ;;  %v758_v19 = vld [vmem:[%s3643_s8] sm:$0xff] }
 0x251   :  { %782 = vmatpush.msra.mxu0 %v2383_v17  ;;  %811 = vmatpush.msrb.mxu1 %v758_v19 }
 0x254   :  { %v532_v22 = vpop.f32.mrf.mxu0  ;;  %v582_v24 = vpop.f32.mrf.mxu1 }
 0x255   :  { %v533_v23 = vadd.f32 %v532_v22, %v71_v20  ;;  %v583_v18 = vadd.f32 %v582_v24, %v74_v21 }
 0x257   :  { %v597_v25 = vsel %vm80_vm0, %v533_v23, -inf  ;;  %v606_v26 = vsel %vm80_vm0, %v583_v18, -inf }
 0x258   :  { %598 = vmax.xlane.f32.xlu0 %v597_v25  ;;  %607 = vmax.xlane.f32.xlu1 %v606_v26 }
 0x25c   :  { %v585_v28 = vpop.f32.mrf.mxu1 }
 0x25d   :  { %v586_v29 = vadd.f32 %v585_v28, %v75_v27 }
 0x25f   :  { %v609_v30 = vsel %vm80_vm0, %v586_v29, -inf }
 0x260   :  { %610 = vmax.xlane.f32.xlu2 %v609_v30 }
 0x2b3   :  { %v590_v31 = vpop.xlane.xlu2 %589 }
 0x2b4   :  { %v612_v32 = vsub.f32 %v524_v62, %v590_v31 }
 0x2b6   :  { %v620_v33 = vmul.f32 1.442695, %v612_v32 }
 0x2b8   :  { %2570 = vpow2.f32 %v620_v33 }
 0x2bb   :  { %v593_v34 = vpop.xlane.xlu2 %592  ;;  %v602_v36 = vpop.xlane.xlu0 %601 }
 0x2bc   :  { %v613_v35 = vsub.f32 %v527_v5, %v593_v34  ;;  %v616_v37 = vsub.f32 %v577_v7, %v602_v36 }
 0x2be   :  { %v2571_v38 = vpop.eup %2570  ;;  %v622_v39 = vmul.f32 1.442695, %v613_v35  ;;  %v628_v40 = vmul.f32 1.442695, %v616_v37 }
 0x2bf   :  { %v636_v41 = vsel %vm80_vm0, %v2571_v38, 0.0 }
 0x2c0   :  { %2572 = vpow2.f32 %v622_v39  ;;  %637 = vadd.xlane.f32.xlu0 %v636_v41  ;;  %v77_v39 = vld [vmem:[%s3670_s29 + $0x8] sm:$0xff]  ;;  %v2695_v41 = vmov 0  }
 0x2c1   :  { %2574 = vpow2.f32 %v628_v40  ;;  %v76_v40 = vld [vmem:[%s3670_s29] sm:$0xff]  ;;  %2546 = vset.pattern.permute.xlu0 %v2695_v41  ;;  %2545 = vset.pattern.permute.xlu2 %v2695_v41 }
 0x2c3   :  { %v596_v42 = vpop.xlane.xlu1 %595  ;;  %v605_v44 = vpop.xlane.xlu2 %604 }
 0x2c4   :  { %v614_v43 = vsub.f32 %v530_v13, %v596_v42  ;;  %v617_v45 = vsub.f32 %v580_v16, %v605_v44  ;;  %v2391_v16 = vld [vmem:[%s3643_s8 + $0x18] sm:$0xff] }
 0x2c5   :  { %875 = vmatpush.msra.mxu3 %v2391_v16 }
 0x2c6   :  { %v2573_v46 = vpop.eup %2572  ;;  %v624_v47 = vmul.f32 1.442695, %v614_v43  ;;  %v630_v49 = vmul.f32 1.442695, %v617_v45 }
 0x2c7   :  { %v2575_v48 = vpop.eup %2574  ;;  %v639_v50 = vsel %vm80_vm0, %v2573_v46, 0.0 }
 0x2c8   :  { %2576 = vpow2.f32 %v624_v47  ;;  %640 = vadd.xlane.f32.xlu1 %v639_v50  ;;  %v648_v51 = vsel %vm80_vm0, %v2575_v48, 0.0 }
 0x2c9   :  { %2578 = vpow2.f32 %v630_v49  ;;  %649 = vadd.xlane.f32.xlu2 %v648_v51 }
 0x2cb   :  { %v599_v52 = vpop.xlane.xlu0 %598  ;;  %v608_v53 = vpop.xlane.xlu1 %607 }
 0x2cc   :  { %v615_v54 = vsub.f32 %v533_v23, %v599_v52  ;;  %v618_v55 = vsub.f32 %v583_v18, %v608_v53 }
 0x2ce   :  { %v2577_v56 = vpop.eup %2576  ;;  %v626_v57 = vmul.f32 1.442695, %v615_v54  ;;  %v632_v59 = vmul.f32 1.442695, %v618_v55  ;;  %v2549_v54 = vld [vmem:[%s3644_s9] ss:$0 sm:$0xff] }
 0x2cf   :  { %v2579_v58 = vpop.eup %2578  ;;  %v642_v60 = vsel %vm80_vm0, %v2577_v56, 0.0 }
 0x2d0   :  { %2580 = vpow2.f32 %v626_v57  ;;  %v651_v61 = vsel %vm80_vm0, %v2579_v58, 0.0  ;;  %643 = vadd.xlane.f32.xlu0 %v642_v60 }
 0x2d1   :  { %2582 = vpow2.f32 %v632_v59  ;;  %652 = vadd.xlane.f32.xlu1 %v651_v61 }
 0x2d3   :  { %v611_v62 = vpop.xlane.xlu2 %610 }
 0x2d4   :  { %v619_v63 = vsub.f32 %v586_v29, %v611_v62 }
 0x2d6   :  { %v2581_v1 = vpop.eup %2580  ;;  %v634_v4 = vmul.f32 1.442695, %v619_v63 }
 0x2d7   :  { %v2583_v3 = vpop.eup %2582  ;;  %v645_v5 = vsel %vm80_vm0, %v2581_v1, 0.0 }
 0x2d8   :  { %v654_v6 = vsel %vm80_vm0, %v2583_v3, 0.0  ;;  %646 = vadd.xlane.f32.xlu2 %v645_v5  ;;  %2584 = vpow2.f32 %v634_v4 }
 0x2d9   :  { %655 = vadd.xlane.f32.xlu0 %v654_v6 }
 0x2de   :  { %v2585_v7 = vpop.eup %2584 }
 0x2df   :  { %v657_v8 = vsel %vm80_vm0, %v2585_v7, 0.0 }
 0x2e0   :  { %658 = vadd.xlane.f32.xlu1 %v657_v8 }
 0x2ed   :  { %898 = vperm.xlu0 %2546, %v77_v39  }
 0x2f0   :  { %893 = vperm.xlu2 %2545, %v76_v40  }
 0x333   :  { %v638_v9 = vpop.xlane.xlu0 %637 }
 0x334   :  { %2586 = vrcp.f32 %v638_v9 }
 0x33a   :  { %v2587_v11 = vpop.eup %2586 }
 0x33b   :  { %v668_v12 = vmul.f32 %v2587_v11, %v2571_v38  ;;  %v641_v14 = vpop.xlane.xlu1 %640 }
 0x33c   :  { %2588 = vrcp.f32 %v641_v14  ;;  %v650_v13 = vpop.xlane.xlu2 %649 }
 0x33d   :  { %2590 = vrcp.f32 %v650_v13  ;;  %2375 = vmatmul.msk.f32.vlgmr.msrb.gmra.mxu2 %vm80_vm0, %v668_v12 }
 0x342   :  { %v2589_v20 = vpop.eup %2588 }
 0x343   :  { %v2591_v21 = vpop.eup %2590  ;;  %v644_v22 = vpop.xlane.xlu0 %643  ;;  %v669_v23 = vmul.f32 %v2589_v20, %v2573_v46 }
 0x344   :  { %v672_v24 = vmul.f32 %v2591_v21, %v2575_v48  ;;  %v653_v18 = vpop.xlane.xlu1 %652  ;;  %2592 = vrcp.f32 %v644_v22  ;;  %v964_v22 = vld [vmem:[%s3647_s12 + $0x18] sm:$0xff] }
 0x345   :  { %2594 = vrcp.f32 %v653_v18  ;;  %2376 = vmatmul.msk.f32.gmra.mxu2 %vm80_vm0, %v669_v23  ;;  %987 = vmatpush.msrb.mxu0 %v964_v22  ;;  %v963_v23 = vld [vmem:[%s3647_s12 + $0x10] sm:$0xff]  ;;  %v961_v18 = vld [vmem:[%s3647_s12] sm:$0xff] }
 0x346   :  { %2379 = vmatmul.msk.f32.vlgmr.msrb.gmra.mxu3 %vm80_vm0, %v672_v24  ;;  %v962_v24 = vld [vmem:[%s3647_s12 + $0x8] sm:$0xff] }
 0x347   :  { %988 = vmatpush.msrb.mxu0 %v963_v23 }
 0x349   :  { %989 = vmatpush.msrb.mxu0 %v962_v24 }
 0x34a   :  { %v2593_v25 = vpop.eup %2592 }
 0x34b   :  { %v2595_v26 = vpop.eup %2594  ;;  %v647_v27 = vpop.xlane.xlu2 %646  ;;  %v670_v28 = vmul.f32 %v2593_v25, %v2577_v56  ;;  %990 = vmatpush.msrb.mxu0 %v961_v18  ;;  %v1096_v18 = vld [vmem:[%s3649_s14 + $0x18] sm:$0xff] }
 0x34c   :  { %2596 = vrcp.f32 %v647_v27  ;;  %v656_v29 = vpop.xlane.xlu0 %655  ;;  %v673_v30 = vmul.f32 %v2595_v26, %v2579_v58 }
 0x34d   :  { %2598 = vrcp.f32 %v656_v29  ;;  %2377 = vmatmul.msk.f32.gmra.mxu2 %vm80_vm0, %v670_v28 }
 0x34e   :  { %2380 = vmatmul.msk.f32.gmra.mxu3 %vm80_vm0, %v673_v30 }
 0x352   :  { %v2597_v31 = vpop.eup %2596 }
 0x353   :  { %v2599_v32 = vpop.eup %2598  ;;  %v671_v33 = vmul.f32 %v2597_v31, %v2581_v1  ;;  %v659_v34 = vpop.xlane.xlu1 %658 }
 0x354   :  { %v674_v35 = vmul.f32 %v2599_v32, %v2583_v3  ;;  %2600 = vrcp.f32 %v659_v34  ;;  %v3120_v57 = vpop.permute.xlu2 %893 }
 0x355   :  { %2378 = vmatmul.msk.f32.gmra.mxu2 %vm80_vm0, %v671_v33 }
 0x356   :  { %2381 = vmatmul.msk.f32.gmra.mxu3 %vm80_vm0, %v674_v35 }
 0x35a   :  { %v2601_v36 = vpop.eup %2600 }
 0x35b   :  { %v675_v37 = vmul.f32 %v2601_v36, %v2585_v7 }
 0x35e   :  { %2382 = vmatmul.msk.f32.gmra.mxu3 %vm80_vm0, %v675_v37 }
 0x35f   :  { %v3128_v7 = vpop.permute.xlu0 %898 }
 0x3c0   :  { %v705_v38 = vpop.f32.mrf.mxu2 }
 0x3c1   :  { %2386 = vmatmul.msk.f32.vlgmr.msrb.gmra.mxu1 %vm481_vm8, %v705_v38  ;;  %v2550_v38 = vld [vmem:[%s3645_s10] ss:$0 sm:$0xff] }
 0x3c8   :  { %v708_v42 = vpop.f32.mrf.mxu2 }
 0x3c9   :  { %v746_v43 = vpop.f32.mrf.mxu3  ;;  %2384 = vmatmul.msk.f32.vlgmr.msra.gmra.mxu0 %vm481_vm8, %v708_v42 }
 0x3ca   :  { %2387 = vmatmul.msk.f32.gmra.mxu1 %vm481_vm8, %v746_v43  ;;  %v2551_v43 = vld [vmem:[%s3646_s11] ss:$0 sm:$0xff] }
 0x3d0   :  { %v711_v44 = vpop.f32.mrf.mxu2 }
 0x3d1   :  { %v749_v45 = vpop.f32.mrf.mxu3  ;;  %2389 = vmatmul.msk.f32.vlgmr.msra.gmra.mxu2 %vm481_vm8, %v711_v44 }
 0x3d2   :  { %2385 = vmatmul.msk.f32.gmra.mxu0 %vm481_vm8, %v749_v45 }
 0x3d8   :  { %v714_v46 = vpop.f32.mrf.mxu2 }
 0x3d9   :  { %v752_v47 = vpop.f32.mrf.mxu3  ;;  %2392 = vmatmul.msk.f32.vlgmr.msra.gmra.mxu3 %vm481_vm8, %v714_v46 }
 0x3da   :  { %2390 = vmatmul.msk.f32.gmra.mxu2 %vm481_vm8, %v752_v47 }
 0x3e1   :  { %v755_v48 = vpop.f32.mrf.mxu3 }
 0x3e2   :  { %2393 = vmatmul.msk.f32.gmra.mxu3 %vm481_vm8, %v755_v48 }
 0x43e   :  { %v813_v50 = vpop.f32.mrf.mxu1 }
 0x446   :  { %v784_v49 = vpop.f32.mrf.mxu0 }
 0x447   :  { %v814_v52 = vadd.f32 %v813_v50, %v784_v49  ;;  %v816_v60 = vpop.f32.mrf.mxu1 }
 0x44f   :  { %v787_v58 = vpop.f32.mrf.mxu0 }
 0x450   :  { %v817_v63 = vadd.f32 %v816_v60, %v787_v58  ;;  %v2552_v60 = vld [vmem:[%s3648_s13] ss:$0 sm:$0xff] }
 0x454   :  { %v844_v51 = vpop.f32.mrf.mxu2 }
 0x455   :  { %v850_v53 = vadd.f32 %v844_v51, %v814_v52 }
 0x45c   :  { %v877_v55 = vpop.f32.mrf.mxu3 }
 0x45d   :  { %v883_v56 = vadd.f32 %v877_v55, %v850_v53  ;;  %v847_v61 = vpop.f32.mrf.mxu2  ;;  %v2696_v53 = vmov 1.4142135  }
 0x45e   :  { %v851_v3 = vadd.f32 %v847_v61, %v817_v63 }
 0x45f   :  { %v889_v59 = vadd.f32 %v2549_v54, %v883_v56 }
 0x461   :  { %v901_v62 = vmul.f32 %v3120_v57, %v889_v59 }
 0x463   :  { %v3124_v1 = vadd.f32 %v901_v62, %v2808_v0 }
 0x465   :  { %v880_v4 = vpop.f32.mrf.mxu3  ;;  %v907_v5 = vsel %vm80_vm0, %v3124_v1, 0.0 }
 0x466   :  { %v884_v6 = vadd.f32 %v880_v4, %v851_v3  ;;  %908 = vadd.xlane.f32.xlu1 %v907_v5 }
 0x468   :  { %v890_v8 = vadd.f32 %v2549_v54, %v884_v6  ;;  %v1100_v6 = vld [vmem:[%s3649_s14 + $0x38] sm:$0xff] }
 0x469   :  { %1116 = vmatpush.msra.mxu1 %v1100_v6 }
 0x46a   :  { %v902_v9 = vmul.f32 %v3128_v7, %v890_v8 }
 0x46c   :  { %v3132_v11 = vadd.f32 %v902_v9, %v2815_v2 }
 0x46e   :  { %v910_v12 = vsel %vm80_vm0, %v3132_v11, 0.0 }
 0x46f   :  { %911 = vadd.xlane.f32.xlu1 %v910_v12 }
 0x4d9   :  { %v909_v0 = vpop.xlane.xlu1 %908 }
 0x4da   :  { %v913_v14 = vmul.f32 %v909_v0, %v2819_v10 }
 0x4dc   :  { %v915_v13 = vsub.f32 %v3124_v1, %v913_v14  ;;  %v1099_v14 = vld [vmem:[%s3649_s14 + $0x30] sm:$0xff] }
 0x4dd   :  { %1117 = vmatpush.msra.mxu1 %v1099_v14 }
 0x4de   :  { %v917_v15 = vmul.f32 %v915_v13, %v915_v13 }
 0x4e0   :  { %v919_v16 = vsel %vm80_vm0, %v917_v15, 0.0 }
 0x4e1   :  { %920 = vadd.xlane.f32.xlu1 %v919_v16 }
 0x4e2   :  { %v912_v17 = vpop.xlane.xlu1 %911 }
 0x4e3   :  { %v914_v19 = vmul.f32 %v912_v17, %v2819_v10  ;;  %v1098_v17 = vld [vmem:[%s3649_s14 + $0x28] sm:$0xff] }
 0x4e4   :  { %1118 = vmatpush.msra.mxu1 %v1098_v17 }
 0x4e5   :  { %v916_v20 = vsub.f32 %v3132_v11, %v914_v19 }
 0x4e7   :  { %v918_v2 = vmul.f32 %v916_v20, %v916_v20 }
 0x4e9   :  { %v922_v21 = vsel %vm80_vm0, %v918_v2, 0.0 }
 0x4ea   :  { %923 = vadd.xlane.f32.xlu2 %v922_v21  ;;  %v1097_v21 = vld [vmem:[%s3649_s14 + $0x20] sm:$0xff] }
 0x4eb   :  { %1119 = vmatpush.msra.mxu1 %v1097_v21 }
 0x4ed   :  { %1120 = vmatpush.msra.mxu1 %v1096_v18 }
 0x554   :  { %v921_v25 = vpop.xlane.xlu1 %920 }
 0x555   :  { %v925_v26 = vmul.f32 %v921_v25, %v2819_v10 }
 0x557   :  { %v927_v27 = vadd.f32 1e-05, %v925_v26 }
 0x559   :  { %2602 = vrsqrt.f32 %v927_v27  ;;  %vm935_vm10 = vweird.f32 %v927_v27 }
 0x55d   :  { %v924_v28 = vpop.xlane.xlu2 %923 }
 0x55e   :  { %v926_v29 = vmul.f32 %v924_v28, %v2819_v10  ;;  %v1095_v28 = vld [vmem:[%s3649_s14 + $0x10] sm:$0xff] }
 0x55f   :  { %v2603_v30 = vpop.eup %2602  ;;  %1121 = vmatpush.msra.mxu1 %v1095_v28 }
 0x560   :  { %v930_v31 = vmul.f32 %v2603_v30, %v927_v27  ;;  %v928_v32 = vadd.f32 1e-05, %v926_v29  ;;  %vm936_vm9 = vweird.f32 %v2603_v30 }
 0x561   :  { %vm937_vm11 = vmor %vm935_vm10, %vm936_vm9 }
 0x562   :  { %v931_v33 = vmul.f32 %v2603_v30, %v930_v31  ;;  %2604 = vrsqrt.f32 %v928_v32  ;;  %vm945_vm13 = vweird.f32 %v928_v32 }
 0x563   :  { %2606 = vrcp.f32 %v2696_v53 }
 0x564   :  { %v932_v34 = vmul.f32 0.5, %v931_v33  ;;  %v1094_v33 = vld [vmem:[%s3649_s14 + $0x8] sm:$0xff] }
 0x565   :  { %1122 = vmatpush.msra.mxu1 %v1094_v33 }
 0x566   :  { %v933_v35 = vsub.f32 1.5, %v932_v34 }
 0x568   :  { %v2605_v36 = vpop.eup %2604  ;;  %v934_v37 = vmul.f32 %v2603_v30, %v933_v35 }
 0x569   :  { %v940_v39 = vmul.f32 %v2605_v36, %v928_v32  ;;  %vm946_vm12 = vweird.f32 %v2605_v36  ;;  %v2607_v54 = vpop.eup %2606 }
 0x56a   :  { %v938_v40 = vsel %vm937_vm11, %v2603_v30, %v934_v37  ;;  %vm947_vm14 = vmor %vm945_vm13, %vm946_vm12  ;;  %v1001_v55 = vmul.f32 1.4142135, %v2607_v54  ;;  %vm1005_vm15 = vweird.f32 %v2607_v54  ;;  %v1093_v37 = vld [vmem:[%s3649_s14] sm:$0xff] }
 0x56b   :  { %v949_v41 = vmul.f32 %v938_v40, %v915_v13  ;;  %v941_v42 = vmul.f32 %v2605_v36, %v940_v39  ;;  %1123 = vmatpush.msra.mxu1 %v1093_v37 }
 0x56c   :  { %v1002_v56 = vsub.f32 1.0, %v1001_v55 }
 0x56d   :  { %v954_v44 = vmul.f32 %v2550_v38, %v949_v41  ;;  %v942_v45 = vmul.f32 0.5, %v941_v42 }
 0x56e   :  { %v1003_v58 = vmul.f32 %v2607_v54, %v1002_v56 }
 0x56f   :  { %v943_v46 = vsub.f32 1.5, %v942_v45  ;;  %v959_v47 = vadd.f32 %v2551_v43, %v954_v44 }
 0x570   :  { %v1004_v59 = vadd.f32 %v2607_v54, %v1003_v58 }
 0x571   :  { %v944_v48 = vmul.f32 %v2605_v36, %v943_v46  ;;  %2394 = vmatmul.msk.f32.vlgmr.msrb.gmra.mxu0 %vm80_vm0, %v959_v47 }
 0x572   :  { %v3167_v62 = vsel %vm1005_vm15, %v2607_v54, %v1004_v59 }
 0x573   :  { %v948_v49 = vsel %vm947_vm14, %v2605_v36, %v944_v48 }
 0x574   :  { %v950_v50 = vmul.f32 %v948_v49, %v916_v20 }
 0x576   :  { %v955_v51 = vmul.f32 %v2550_v38, %v950_v50 }
 0x578   :  { %v960_v52 = vadd.f32 %v2551_v43, %v955_v51 }
 0x57a   :  { %2395 = vmatmul.msk.f32.gmra.mxu0 %vm80_vm0, %v960_v52 }
 0x5ee   :  { %v992_v61 = vpop.f32.mrf.mxu0 }
 0x5ef   :  { %v3169_v63 = vadd.f32 %v2552_v60, %v992_v61 }
 0x5f1   :  { %v3173_v3 = vmul.f32 %v3167_v62, %v3169_v63 }
 0x5f3   :  { %v1009_v4 = vmul.f32 %v3173_v3, %v3173_v3 }
 0x5f5   :  { %v1010_v5 = vmin.f32 %v1009_v4, 16.0 }
 0x5f7   :  { %v1011_v8 = vmul.f32 2.1237322e-06, %v1010_v5  ;;  %v1022_v9 = vmul.f32 3.8918573e-05, %v1010_v5  ;;  %v995_v12 = vpop.f32.mrf.mxu0 }
 0x5f8   :  { %v3180_v0 = vadd.f32 %v2552_v60, %v995_v12 }
 0x5f9   :  { %v1012_v13 = vadd.f32 0.00028619796, %v1011_v8  ;;  %v1023_v15 = vadd.f32 0.001143296, %v1022_v9 }
 0x5fa   :  { %v3187_v16 = vmul.f32 %v3167_v62, %v3180_v0 }
 0x5fb   :  { %v1013_v19 = vmul.f32 %v1012_v13, %v1010_v5  ;;  %v1024_v20 = vmul.f32 %v1023_v15, %v1010_v5 }
 0x5fc   :  { %v1049_v2 = vmul.f32 %v3187_v16, %v3187_v16 }
 0x5fd   :  { %v1025_v22 = vadd.f32 0.014752088, %v1024_v20  ;;  %v1014_v23 = vadd.f32 0.0036580483, %v1013_v19 }
 0x5fe   :  { %v1050_v24 = vmin.f32 %v1049_v2, 16.0 }
 0x5ff   :  { %v1026_v25 = vmul.f32 %v1025_v22, %v1010_v5  ;;  %v1015_v30 = vmul.f32 %v1014_v23, %v1010_v5 }
 0x600   :  { %v1051_v26 = vmul.f32 2.1237322e-06, %v1050_v24  ;;  %v1062_v27 = vmul.f32 3.8918573e-05, %v1050_v24 }
 0x601   :  { %v1027_v29 = vadd.f32 0.112945676, %v1026_v25  ;;  %v1016_v39 = vadd.f32 0.05243302, %v1015_v30 }
 0x602   :  { %v1052_v31 = vadd.f32 0.00028619796, %v1051_v26  ;;  %v1063_v32 = vadd.f32 0.001143296, %v1062_v27  ;;  %v998_v26 = vmul.f32 0.5, %v3169_v63 }
 0x603   :  { %v1028_v34 = vmul.f32 %v1027_v29, %v1010_v5  ;;  %v1017_v45 = vmul.f32 %v1016_v39, %v1010_v5 }
 0x604   :  { %v1053_v35 = vmul.f32 %v1052_v31, %v1050_v24  ;;  %v1064_v36 = vmul.f32 %v1063_v32, %v1050_v24 }
 0x605   :  { %v1029_v38 = vadd.f32 0.4994258, %v1028_v34  ;;  %v1018_v49 = vadd.f32 0.18741608, %v1017_v45  ;;  %v999_v34 = vmul.f32 0.5, %v3180_v0 }
 0x606   :  { %v1065_v40 = vadd.f32 0.014752088, %v1064_v36  ;;  %v1054_v42 = vadd.f32 0.0036580483, %v1053_v35  ;;  %v2553_v36 = vld [vmem:[%s3650_s15] ss:$0 sm:$0xff] }
 0x607   :  { %v1030_v41 = vmul.f32 %v1029_v38, %v1010_v5  ;;  %v1019_v54 = vmul.f32 %v1018_v49, %v1010_v5 }
 0x608   :  { %v1066_v43 = vmul.f32 %v1065_v40, %v1050_v24  ;;  %v1055_v47 = vmul.f32 %v1054_v42, %v1050_v24 }
 0x609   :  { %v1031_v44 = vadd.f32 1.0, %v1030_v41  ;;  %v1020_v61 = vadd.f32 1.1283791, %v1019_v54  ;;  %v2405_v54 = vld [vmem:[%s3640_s5 + $0x98] sm:$0xff] }
 0x60a   :  { %v1067_v46 = vadd.f32 0.112945676, %v1066_v43  ;;  %v1056_v51 = vadd.f32 0.05243302, %v1055_v47  ;;  %1220 = vmatpush.msrb.mxu2 %v2405_v54  ;;  %v2452_v54 = vld [vmem:[%s3642_s7 + $0x90] sm:$0xff] }
 0x60b   :  { %2608 = vrcp.f32 %v1031_v44  ;;  %v1043_v60 = vand.u32 2147483648, %v1031_v44  ;;  %v1041_v6 = vand.u32 2147483647, %v1031_v44  ;;  %vm1037_vm2 = vweird.f32 %v1031_v44 }
 0x60c   :  { %v1068_v48 = vmul.f32 %v1067_v46, %v1050_v24  ;;  %v1057_v58 = vmul.f32 %v1056_v51, %v1050_v24  ;;  %v1021_v13 = vmul.f32 %v1020_v61, %v3173_v3  ;;  %v2423_v51 = vld [vmem:[%s3640_s5 + $0xf8] sm:$0xff]  ;;  %v2409_v61 = vld [vmem:[%s3640_s5 + $0xa8] sm:$0xff] }
 0x60d   :  { %v1044_v12 = vor.u32 1.1754944e-38, %v1043_v60  ;;  %vm1042_vm4 = vcmp.eq.f32.partialorder %v1041_v6, 8.507059e+37  ;;  %1304 = vmatpush.msrb.mxu1 %v2423_v51  ;;  %v2421_v60 = vld [vmem:[%s3640_s5 + $0xe8] sm:$0xff]  ;;  %v2459_v51 = vld [vmem:[%s3642_s7 + $0xb8] sm:$0xff] }
 0x60e   :  { %v1069_v50 = vadd.f32 0.4994258, %v1068_v48  ;;  %v1058_v8 = vadd.f32 0.18741608, %v1057_v58  ;;  %v2416_v58 = vld [vmem:[%s3640_s5 + $0xd0] sm:$0xff]  ;;  %v2415_v6 = vld [vmem:[%s3640_s5 + $0xc8] sm:$0xff] }
 0x610   :  { %v1070_v52 = vmul.f32 %v1069_v50, %v1050_v24  ;;  %v1059_v17 = vmul.f32 %v1058_v8, %v1050_v24  ;;  %v2420_v8 = vld [vmem:[%s3640_s5 + $0xe0] sm:$0xff] }
 0x611   :  { %v2609_v53 = vpop.eup %2608 }
 0x612   :  { %v1033_v55 = vmul.f32 %v2609_v53, %v1031_v44  ;;  %v1071_v56 = vadd.f32 1.0, %v1070_v52  ;;  %vm1038_vm1 = vweird.f32 %v2609_v53  ;;  %v1060_v23 = vadd.f32 1.1283791, %v1059_v17  ;;  %v2411_v52 = vld [vmem:[%s3640_s5 + $0xb8] sm:$0xff] }
 0x613   :  { %vm1039_vm3 = vmor %vm1037_vm2, %vm1038_vm1  ;;  %1248 = vmatpush.msrb.mxu3 %v2411_v52  ;;  %v2447_v17 = vld [vmem:[%s3641_s6 + $0xf8] sm:$0xff] }
 0x614   :  { %v1034_v59 = vsub.f32 1.0, %v1033_v55  ;;  %2610 = vrcp.f32 %v1071_v56  ;;  %v1083_v22 = vand.u32 2147483648, %v1071_v56  ;;  %v1081_v25 = vand.u32 2147483647, %v1071_v56  ;;  %v2422_v55 = vld [vmem:[%s3640_s5 + $0xf0] sm:$0xff] }
 0x615   :  { %vm1077_vm6 = vweird.f32 %v1071_v56  ;;  %v1061_v24 = vmul.f32 %v1060_v23, %v3187_v16  ;;  %1305 = vmatpush.msrb.mxu1 %v2422_v55  ;;  %v2440_v23 = vld [vmem:[%s3641_s6 + $0xd0] sm:$0xff] }
 0x616   :  { %v1035_v4 = vmul.f32 %v2609_v53, %v1034_v59  ;;  %v1084_v29 = vor.u32 1.1754944e-38, %v1083_v22  ;;  %vm1082_vm10 = vcmp.eq.f32.partialorder %v1081_v25, 8.507059e+37  ;;  %v2404_v59 = vld [vmem:[%s3640_s5 + $0x90] sm:$0xff] }
 0x617   :  { %1221 = vmatpush.msrb.mxu2 %v2404_v59  ;;  %1306 = vmatpush.msrb.mxu1 %v2421_v60  ;;  %v2434_v22 = vld [vmem:[%s3641_s6 + $0xb0] sm:$0xff] }
 0x618   :  { %v1036_v9 = vadd.f32 %v2609_v53, %v1035_v4  ;;  %v2403_v4 = vld [vmem:[%s3640_s5 + $0x88] sm:$0xff]  ;;  %v2428_v25 = vld [vmem:[%s3641_s6 + $0x90] sm:$0xff] }
 0x619   :  { %1222 = vmatpush.msrb.mxu2 %v2403_v4  ;;  %1307 = vmatpush.msrb.mxu1 %v2420_v8  ;;  %v2458_v55 = vld [vmem:[%s3642_s7 + $0xb0] sm:$0xff]  ;;  %v2457_v4 = vld [vmem:[%s3642_s7 + $0xa8] sm:$0xff] }
 0x61a   :  { %v2611_v14 = vpop.eup %2610  ;;  %v1040_v15 = vsel %vm1039_vm3, %v2609_v53, %v1036_v9  ;;  %v2417_v53 = vld [vmem:[%s3640_s5 + $0xd8] sm:$0xff]  ;;  %v2402_v9 = vld [vmem:[%s3640_s5 + $0x80] sm:$0xff]  ;;  %v2470_v59 = vld [vmem:[%s3642_s7 + $0xf0] sm:$0xff] }
 0x61b   :  { %v1045_v5 = vsel %vm1042_vm4, %v1044_v12, %v1040_v15  ;;  %v1073_v19 = vmul.f32 %v2611_v14, %v1071_v56  ;;  %vm1078_vm5 = vweird.f32 %v2611_v14  ;;  %1276 = vmatpush.msra.mxu0 %v2417_v53  ;;  %v2410_v56 = vld [vmem:[%s3640_s5 + $0xb0] sm:$0xff]  ;;  %v2408_v12 = vld [vmem:[%s3640_s5 + $0xa0] sm:$0xff]  ;;  %1223 = vmatpush.msrb.mxu2 %v2402_v9  ;;  %v2471_v53 = vld [vmem:[%s3642_s7 + $0xf8] sm:$0xff] }
 0x61c   :  { %v1046_v20 = vmul.f32 %v1045_v5, %v1021_v13  ;;  %vm1079_vm9 = vmor %vm1077_vm6, %vm1078_vm5  ;;  %1249 = vmatpush.msrb.mxu3 %v2410_v56  ;;  %v2450_v9 = vld [vmem:[%s3642_s7 + $0x80] sm:$0xff] }
 0x61d   :  { %v1074_v2 = vsub.f32 1.0, %v1073_v19  ;;  %1277 = vmatpush.msra.mxu0 %v2416_v58  ;;  %v2435_v19 = vld [vmem:[%s3641_s6 + $0xb8] sm:$0xff]  ;;  %v2464_v58 = vld [vmem:[%s3642_s7 + $0xd0] sm:$0xff] }
 0x61e   :  { %v2396_v21 = vclamps-f32 %v1046_v20, 1.0  ;;  %1250 = vmatpush.msrb.mxu3 %v2409_v61  ;;  %v2441_v20 = vld [vmem:[%s3641_s6 + $0xd8] sm:$0xff]  ;;  %v2451_v61 = vld [vmem:[%s3642_s7 + $0x88] sm:$0xff] }
 0x61f   :  { %v1075_v18 = vmul.f32 %v2611_v14, %v1074_v2  ;;  %1278 = vmatpush.msra.mxu0 %v2415_v6  ;;  %v2446_v2 = vld [vmem:[%s3641_s6 + $0xf0] sm:$0xff]  ;;  %v2463_v6 = vld [vmem:[%s3642_s7 + $0xc8] sm:$0xff] }
 0x620   :  { %v1089_v27 = vadd.f32 1.0, %v2396_v21  ;;  %1251 = vmatpush.msrb.mxu3 %v2408_v12  ;;  %v2429_v21 = vld [vmem:[%s3641_s6 + $0x98] sm:$0xff]  ;;  %v2456_v12 = vld [vmem:[%s3642_s7 + $0xa0] sm:$0xff] }
 0x621   :  { %v1076_v28 = vadd.f32 %v2611_v14, %v1075_v18  ;;  %1332 = vmatpush.msra.mxu2 %v2429_v21  ;;  %v2445_v18 = vld [vmem:[%s3641_s6 + $0xe8] sm:$0xff] }
 0x622   :  { %v1091_v3 = vmul.f32 %v1089_v27, %v998_v26  ;;  %1360 = vmatpush.msra.mxu3 %v2435_v19  ;;  %v2433_v26 = vld [vmem:[%s3641_s6 + $0xa8] sm:$0xff] }
 0x623   :  { %v1080_v30 = vsel %vm1079_vm9, %v2611_v14, %v1076_v28  ;;  %v2414_v14 = vld [vmem:[%s3640_s5 + $0xc0] sm:$0xff]  ;;  %1333 = vmatpush.msra.mxu2 %v2428_v25  ;;  %v2427_v27 = vld [vmem:[%s3641_s6 + $0x88] sm:$0xff] }
 0x624   :  { %v1085_v31 = vsel %vm1082_vm10, %v1084_v29, %v1080_v30  ;;  %2398 = vmatmul.msk.f32.vlgmr.msra.gmra.mxu1 %vm1101_vm7, %v1091_v3  ;;  %1279 = vmatpush.msra.mxu0 %v2414_v14  ;;  %v2439_v28 = vld [vmem:[%s3641_s6 + $0xc8] sm:$0xff]  ;;  %v2444_v29 = vld [vmem:[%s3641_s6 + $0xe0] sm:$0xff] }
 0x625   :  { %v1086_v32 = vmul.f32 %v1085_v31, %v1061_v24  ;;  %1416 = vmatpush.msra.mxu1 %v2447_v17  ;;  %1361 = vmatpush.msra.mxu3 %v2434_v22  ;;  %v2426_v24 = vld [vmem:[%s3641_s6 + $0x80] sm:$0xff] }
 0x626   :  { %1388 = vmatpush.msrb.mxu0 %v2441_v20  ;;  %v2432_v30 = vld [vmem:[%s3641_s6 + $0xa0] sm:$0xff]  ;;  %1334 = vmatpush.msra.mxu2 %v2427_v27 }
 0x627   :  { %v2397_v33 = vclamps-f32 %v1086_v32, 1.0  ;;  %1417 = vmatpush.msra.mxu1 %v2446_v2  ;;  %1362 = vmatpush.msra.mxu3 %v2433_v26  ;;  %v2438_v32 = vld [vmem:[%s3641_s6 + $0xc0] sm:$0xff] }
 0x628   :  { %1389 = vmatpush.msrb.mxu0 %v2440_v23  ;;  %1335 = vmatpush.msra.mxu2 %v2426_v24 }
 0x629   :  { %v1090_v35 = vadd.f32 1.0, %v2397_v33  ;;  %1418 = vmatpush.msra.mxu1 %v2445_v18  ;;  %1363 = vmatpush.msra.mxu3 %v2432_v30 }
 0x62a   :  { %1390 = vmatpush.msrb.mxu0 %v2439_v28 }
 0x62b   :  { %v1092_v63 = vmul.f32 %v1090_v35, %v999_v34  ;;  %1419 = vmatpush.msra.mxu1 %v2444_v29 }
 0x62c   :  { %1391 = vmatpush.msrb.mxu0 %v2438_v32 }
 0x62d   :  { %2399 = vmatmul.msk.f32.gmra.mxu1 %vm1101_vm7, %v1092_v63 }
 0x6a1   :  { %v1125_v37 = vpop.f32.mrf.mxu1 }
 0x6a2   :  { %v1131_v16 = vadd.f32 %v1125_v37, %v3124_v1 }
 0x6a4   :  { %v3219_v38 = vadd.f32 %v2553_v36, %v1131_v16 }
 0x6a6   :  { %v1143_v39 = vsel %vm80_vm0, %v3219_v38, 0.0 }
 0x6a7   :  { %1144 = vadd.xlane.f32.xlu1 %v1143_v39 }
 0x6aa   :  { %v1128_v40 = vpop.f32.mrf.mxu1 }
 0x6ab   :  { %v1132_v0 = vadd.f32 %v1128_v40, %v3132_v11  ;;  %v2554_v40 = vld [vmem:[%s3667_s24 + $0x1] ss:$0 sm:$0xff] }
 0x6ad   :  { %v3224_v41 = vadd.f32 %v2553_v36, %v1132_v0 }
 0x6af   :  { %v1146_v42 = vsel %vm80_vm0, %v3224_v41, 0.0 }
 0x6b0   :  { %1147 = vadd.xlane.f32.xlu1 %v1146_v42 }
 0x71a   :  { %v1145_v43 = vpop.xlane.xlu1 %1144 }
 0x71b   :  { %v1149_v44 = vmul.f32 %v1145_v43, %v2819_v10  ;;  %v2555_v43 = vld [vmem:[%s3668_s3 + $0x1] ss:$0 sm:$0xff]  ;;  %s2287_s3 = sshll.u32 %s3655_s20, 4  ;;  %s2288_s3 = int_to_ptr.hbm [resolvable:$true] %s2287_s3 }
 0x71d   :  { %v3230_v1 = vsub.f32 %v3219_v38, %v1149_v44 }
 0x71f   :  { %v1153_v45 = vmul.f32 %v3230_v1, %v3230_v1 }
 0x721   :  { %v1155_v46 = vsel %vm80_vm0, %v1153_v45, 0.0 }
 0x722   :  { %1156 = vadd.xlane.f32.xlu0 %v1155_v46 }
 0x723   :  { %v1148_v47 = vpop.xlane.xlu1 %1147 }
 0x724   :  { %v1150_v11 = vmul.f32 %v1148_v47, %v2819_v10 }
 0x726   :  { %v3237_v48 = vsub.f32 %v3224_v41, %v1150_v11 }
 0x728   :  { %v1154_v49 = vmul.f32 %v3237_v48, %v3237_v48 }
 0x72a   :  { %v1158_v50 = vsel %vm80_vm0, %v1154_v49, 0.0 }
 0x72b   :  { %1159 = vadd.xlane.f32.xlu1 %v1158_v50  ;;  %v2453_v50 = vld [vmem:[%s3642_s7 + $0x98] sm:$0xff] }
 0x795   :  { %v1157_v13 = vpop.xlane.xlu0 %1156 }
 0x796   :  { %v1161_v15 = vmul.f32 %v1157_v13, %v2819_v10  ;;  %v2462_v13 = vld [vmem:[%s3642_s7 + $0xc0] sm:$0xff] }
 0x798   :  { %v1163_v5 = vadd.f32 1e-05, %v1161_v15  ;;  %v2468_v15 = vld [vmem:[%s3642_s7 + $0xe0] sm:$0xff] }
 0x79a   :  { %2612 = vrsqrt.f32 %v1163_v5  ;;  %vm1171_vm12 = vweird.f32 %v1163_v5 }
 0x79e   :  { %v1160_v3 = vpop.xlane.xlu1 %1159 }
 0x79f   :  { %v1162_v31 = vmul.f32 %v1160_v3, %v2819_v10 }
 0x7a0   :  { %v2613_v33 = vpop.eup %2612 }
 0x7a1   :  { %v1166_v34 = vmul.f32 %v2613_v33, %v1163_v5  ;;  %v1164_v35 = vadd.f32 1e-05, %v1162_v31  ;;  %vm1172_vm11 = vweird.f32 %v2613_v33 }
 0x7a2   :  { %vm1173_vm13 = vmor %vm1171_vm12, %vm1172_vm11 }
 0x7a3   :  { %v1167_v63 = vmul.f32 %v2613_v33, %v1166_v34  ;;  %2614 = vrsqrt.f32 %v1164_v35  ;;  %vm1181_vm15 = vweird.f32 %v1164_v35 }
 0x7a5   :  { %v1168_v36 = vmul.f32 0.5, %v1167_v63 }
 0x7a7   :  { %v1169_v37 = vsub.f32 1.5, %v1168_v36 }
 0x7a9   :  { %v2615_v16 = vpop.eup %2614  ;;  %v1170_v39 = vmul.f32 %v2613_v33, %v1169_v37 }
 0x7aa   :  { %v1176_v0 = vmul.f32 %v2615_v16, %v1164_v35  ;;  %vm1182_vm14 = vweird.f32 %v2615_v16 }
 0x7ab   :  { %v1174_v42 = vsel %vm1173_vm13, %v2613_v33, %v1170_v39  ;;  %vm1183_vm1 = vmor %vm1181_vm15, %vm1182_vm14 }
 0x7ac   :  { %v1185_v44 = vmul.f32 %v1174_v42, %v3230_v1  ;;  %v1177_v45 = vmul.f32 %v2615_v16, %v1176_v0  ;;  %v2465_v1 = vld [vmem:[%s3642_s7 + $0xd8] sm:$0xff] }
 0x7ae   :  { %v1190_v46 = vmul.f32 %v2554_v40, %v1185_v44  ;;  %v1178_v47 = vmul.f32 0.5, %v1177_v45  ;;  %v2662_v45 = vld [vmem:[%s3669_s4 + $0x20] sm:$0xff] }
 0x7b0   :  { %v1195_v11 = vadd.f32 %v2555_v43, %v1190_v46  ;;  %v1179_v49 = vsub.f32 1.5, %v1178_v47 }
 0x7b2   :  { %v1180_v52 = vmul.f32 %v2615_v16, %v1179_v49  ;;  %2406 = vmatmul.msk.f32.vlgmr.msrb.gmra.mxu2 %vm80_vm0, %v1195_v11  ;;  %2412 = vmatmul.msk.f32.vlgmr.msrb.gmra.mxu3 %vm80_vm0, %v1195_v11 }
 0x7b3   :  { %2418 = vmatmul.msk.f32.vlgmr.msra.gmra.mxu0 %vm80_vm0, %v1195_v11  ;;  %2424 = vmatmul.msk.f32.vlgmr.msrb.gmra.mxu1 %vm80_vm0, %v1195_v11 }
 0x7b4   :  { %v1184_v56 = vsel %vm1183_vm1, %v2615_v16, %v1180_v52  ;;  %1444 = vmatpush.msrb.mxu2 %v2453_v50  ;;  %1472 = vmatpush.msrb.mxu3 %v2459_v51  ;;  %v2660_v16 = vld [vmem:[%s3669_s4] sm:$0xff]  ;;  %v2663_v51 = vld [vmem:[%s3669_s4 + $0x10] sm:$0xff] }
 0x7b5   :  { %v1186_v60 = vmul.f32 %v1184_v56, %v3237_v48  ;;  %1500 = vmatpush.msra.mxu0 %v2465_v1  ;;  %1528 = vmatpush.msrb.mxu1 %v2471_v53  ;;  %v2469_v48 = vld [vmem:[%s3642_s7 + $0xe8] sm:$0xff] }
 0x7b6   :  { %1445 = vmatpush.msrb.mxu2 %v2452_v54  ;;  %1473 = vmatpush.msrb.mxu3 %v2458_v55  ;;  %v2664_v1 = vld [vmem:[%s3669_s4 + $0x28] sm:$0xff] }
 0x7b7   :  { %v1191_v8 = vmul.f32 %v2554_v40, %v1186_v60  ;;  %1501 = vmatpush.msra.mxu0 %v2464_v58  ;;  %1529 = vmatpush.msrb.mxu1 %v2470_v59  ;;  %v2665_v59 = vld [vmem:[%s3669_s4 + $0x18] sm:$0xff] }
 0x7b8   :  { %1446 = vmatpush.msrb.mxu2 %v2451_v61  ;;  %1474 = vmatpush.msrb.mxu3 %v2457_v4  ;;  %v2666_v61 = vld [vmem:[%s3669_s4 + $0x30] sm:$0xff] }
 0x7b9   :  { %v1196_v14 = vadd.f32 %v2555_v43, %v1191_v8  ;;  %1502 = vmatpush.msra.mxu0 %v2463_v6  ;;  %1530 = vmatpush.msrb.mxu1 %v2469_v48  ;;  %v2661_v43 = vld [vmem:[%s3669_s4 + $0x8] sm:$0xff] }
 0x7ba   :  { %1447 = vmatpush.msrb.mxu2 %v2450_v9  ;;  %1475 = vmatpush.msrb.mxu3 %v2456_v12  ;;  %v2667_v9 = vld [vmem:[%s3669_s4 + $0x38] sm:$0xff] }
 0x7bb   :  { %2407 = vmatmul.msk.f32.gmra.mxu2 %vm80_vm0, %v1196_v14  ;;  %2413 = vmatmul.msk.f32.gmra.mxu3 %vm80_vm0, %v1196_v14 }
 0x7bc   :  { %2419 = vmatmul.msk.f32.gmra.mxu0 %vm80_vm0, %v1196_v14  ;;  %2425 = vmatmul.msk.f32.gmra.mxu1 %vm80_vm0, %v1196_v14 }
 0x7bd   :  { %1503 = vmatpush.msra.mxu0 %v2462_v13  ;;  %1531 = vmatpush.msrb.mxu1 %v2468_v15 }
 0x7c3   :  { %2430 = vmatmul.msk.f32.vlgmr.msra.gmra.mxu2 %vm80_vm0, %v1195_v11  ;;  %2436 = vmatmul.msk.f32.vlgmr.msra.gmra.mxu3 %vm80_vm0, %v1195_v11 }
 0x7c4   :  { %2442 = vmatmul.msk.f32.vlgmr.msrb.gmra.mxu0 %vm80_vm0, %v1195_v11  ;;  %2448 = vmatmul.msk.f32.vlgmr.msra.gmra.mxu1 %vm80_vm0, %v1195_v11 }
 0x7cb   :  { %2431 = vmatmul.msk.f32.gmra.mxu2 %vm80_vm0, %v1196_v14  ;;  %2437 = vmatmul.msk.f32.gmra.mxu3 %vm80_vm0, %v1196_v14 }
 0x7cc   :  { %2443 = vmatmul.msk.f32.gmra.mxu0 %vm80_vm0, %v1196_v14  ;;  %2449 = vmatmul.msk.f32.gmra.mxu1 %vm80_vm0, %v1196_v14 }
 0x7d3   :  { %2454 = vmatmul.msk.f32.vlgmr.msrb.gmra.mxu2 %vm80_vm0, %v1195_v11  ;;  %2460 = vmatmul.msk.f32.vlgmr.msrb.gmra.mxu3 %vm80_vm0, %v1195_v11 }
 0x7d4   :  { %2466 = vmatmul.msk.f32.vlgmr.msra.gmra.mxu0 %vm80_vm0, %v1195_v11  ;;  %2472 = vmatmul.msk.f32.vlgmr.msrb.gmra.mxu1 %vm80_vm0, %v1195_v11 }
 0x7db   :  { %2455 = vmatmul.msk.f32.gmra.mxu2 %vm80_vm0, %v1196_v14  ;;  %2461 = vmatmul.msk.f32.gmra.mxu3 %vm80_vm0, %v1196_v14 }
 0x7dc   :  { %2467 = vmatmul.msk.f32.gmra.mxu0 %vm80_vm0, %v1196_v14  ;;  %2473 = vmatmul.msk.f32.gmra.mxu1 %vm80_vm0, %v1196_v14 }
 0x830   :  { %v1281_v5 = vpop.f32.mrf.mxu0  ;;  %v1309_v17 = vpop.f32.mrf.mxu1 }
 0x835   :  { %v1225_v19 = vpop.f32.mrf.mxu2  ;;  %v1253_v20 = vpop.f32.mrf.mxu3 }
 0x839   :  { %v1284_v2 = vpop.f32.mrf.mxu0  ;;  %v1312_v21 = vpop.f32.mrf.mxu1 }
 0x83e   :  { %v1228_v22 = vpop.f32.mrf.mxu2  ;;  %v1256_v23 = vpop.f32.mrf.mxu3 }
 0x841   :  { %v1393_v18 = vpop.f32.mrf.mxu0  ;;  %v1421_v25 = vpop.f32.mrf.mxu1 }
 0x842   :  { %2474 = vmatpush.xpose.msk.msra.mxu2 %vm481_vm8, %v1421_v25 }
 0x846   :  { %2475 = vmatpush.xpose.msk.msra.mxu2 %vm481_vm8, %v1393_v18  ;;  %v1337_v26 = vpop.f32.mrf.mxu2  ;;  %v1365_v27 = vpop.f32.mrf.mxu3 }
 0x849   :  { %v1396_v28 = vpop.f32.mrf.mxu0  ;;  %v1424_v3 = vpop.f32.mrf.mxu1 }
 0x84a   :  { %2476 = vmatpush.xpose.msk.msra.mxu2 %vm481_vm8, %v1365_v27  ;;  %2482 = vmatpush.xpose.msk.msra.mxu3 %vm481_vm8, %v1424_v3 }
 0x84e   :  { %2477 = vmatpush.xpose.msk.msra.mxu2 %vm481_vm8, %v1337_v26  ;;  %2483 = vmatpush.xpose.msk.msra.mxu3 %vm481_vm8, %v1396_v28  ;;  %v1340_v29 = vpop.f32.mrf.mxu2  ;;  %v1368_v24 = vpop.f32.mrf.mxu3 }
 0x851   :  { %v1505_v30 = vpop.f32.mrf.mxu0  ;;  %v1533_v31 = vpop.f32.mrf.mxu1  ;;  %2478 = vmatmul.msk.f32.vlgmr.msra.gmra.mxu2 %vm481_vm8, %v1225_v19 }
 0x852   :  { %2484 = vmatpush.xpose.msk.msra.mxu3 %vm481_vm8, %v1368_v24  ;;  %1757 = vmatpush.msrb.mxu0 %v1533_v31 }
 0x854   :  { %1758 = vmatpush.msrb.mxu0 %v1505_v30 }
 0x856   :  { %2485 = vmatpush.xpose.msk.msra.mxu3 %vm481_vm8, %v1340_v29  ;;  %v1477_v32 = vpop.f32.mrf.mxu3  ;;  %v1449_v33 = vpop.f32.mrf.mxu2 }
 0x857   :  { %1759 = vmatpush.msrb.mxu0 %v1477_v32 }
 0x859   :  { %v1536_v34 = vpop.f32.mrf.mxu1  ;;  %2479 = vmatmul.msk.f32.gmra.mxu2 %vm481_vm8, %v1253_v20  ;;  %2486 = vmatmul.msk.f32.vlgmr.msra.gmra.mxu3 %vm481_vm8, %v1228_v22  ;;  %v1508_v35 = vpop.f32.mrf.mxu0 }
 0x85a   :  { %1760 = vmatpush.msrb.mxu0 %v1449_v33  ;;  %1798 = vmatpush.msra.mxu1 %v1536_v34 }
 0x85c   :  { %1799 = vmatpush.msra.mxu1 %v1508_v35 }
 0x85e   :  { %v1480_v63 = vpop.f32.mrf.mxu3  ;;  %v1452_v36 = vpop.f32.mrf.mxu2 }
 0x85f   :  { %1800 = vmatpush.msra.mxu1 %v1480_v63 }
 0x861   :  { %2480 = vmatmul.msk.f32.gmra.mxu2 %vm481_vm8, %v1281_v5  ;;  %2487 = vmatmul.msk.f32.gmra.mxu3 %vm481_vm8, %v1256_v23 }
 0x862   :  { %1801 = vmatpush.msra.mxu1 %v1452_v36 }
 0x869   :  { %2481 = vmatmul.msk.f32.gmra.mxu2 %vm481_vm8, %v1309_v17  ;;  %2488 = vmatmul.msk.f32.gmra.mxu3 %vm481_vm8, %v1284_v2 }
 0x871   :  { %2489 = vmatmul.msk.f32.gmra.mxu3 %vm481_vm8, %v1312_v21 }
 0x8d4   :  { %v1580_v37 = vpop.f32.mrf.mxu2 }
 0x8d5   :  { %v1581_v39 = vadd.f32 %v2660_v16, %v1580_v37 }
 0x8d7   :  { %v1645_v40 = vsel %vm80_vm0, %v1581_v39, -inf }
 0x8d8   :  { %1646 = vmax.xlane.f32.xlu1 %v1645_v40 }
 0x8dc   :  { %v1583_v0 = vpop.f32.mrf.mxu2  ;;  %v1633_v42 = vpop.f32.mrf.mxu3 }
 0x8dd   :  { %v1584_v44 = vadd.f32 %v2661_v43, %v1583_v0  ;;  %v1634_v46 = vadd.f32 %v2662_v45, %v1633_v42 }
 0x8df   :  { %v1657_v47 = vsel %vm80_vm0, %v1634_v46, -inf  ;;  %v1648_v11 = vsel %vm80_vm0, %v1584_v44, -inf }
 0x8e0   :  { %1658 = vmax.xlane.f32.xlu2 %v1657_v47  ;;  %1649 = vmax.xlane.f32.xlu1 %v1648_v11 }
 0x8e4   :  { %v1586_v49 = vpop.f32.mrf.mxu2  ;;  %v1636_v50 = vpop.f32.mrf.mxu3 }
 0x8e5   :  { %v1587_v52 = vadd.f32 %v2663_v51, %v1586_v49  ;;  %v1637_v53 = vadd.f32 %v2664_v1, %v1636_v50 }
 0x8e7   :  { %v1660_v54 = vsel %vm80_vm0, %v1637_v53, -inf  ;;  %v1651_v55 = vsel %vm80_vm0, %v1587_v52, -inf }
 0x8e8   :  { %1661 = vmax.xlane.f32.xlu2 %v1660_v54  ;;  %1652 = vmax.xlane.f32.xlu1 %v1651_v55  ;;  %v2499_v55 = vld [vmem:[%s3643_s8 + $0x28] sm:$0xff] }
 0x8e9   :  { %1840 = vmatpush.msrb.mxu2 %v2499_v55 }
 0x8ec   :  { %v1589_v56 = vpop.f32.mrf.mxu2  ;;  %v1639_v58 = vpop.f32.mrf.mxu3 }
 0x8ed   :  { %v1590_v60 = vadd.f32 %v2665_v59, %v1589_v56  ;;  %v1640_v4 = vadd.f32 %v2666_v61, %v1639_v58  ;;  %v2498_v56 = vld [vmem:[%s3643_s8 + $0x20] sm:$0xff]  ;;  %v2504_v58 = vld [vmem:[%s3643_s8 + $0x30] sm:$0xff]  ;;  %v2507_v59 = vld [vmem:[%s3643_s8 + $0x38] sm:$0xff]  ;;  %s2698_s8 = smov 128  }
 0x8ee   :  { %1869 = vmatpush.msrb.mxu3 %v2498_v56  ;;  %1900 = vmatpush.msra.mxu0 %v2504_v58  ;;  %v2516_v58 = vld [vmem:[%s3647_s12 + $0x38] sm:$0xff] }
 0x8ef   :  { %v1663_v6 = vsel %vm80_vm0, %v1640_v4, -inf  ;;  %v1654_v48 = vsel %vm80_vm0, %v1590_v60, -inf  ;;  %1933 = vmatpush.msrb.mxu1 %v2507_v59  ;;  %2040 = vmatpush.msra.mxu2 %v2516_v58  ;;  %v2515_v59 = vld [vmem:[%s3647_s12 + $0x30] sm:$0xff] }
 0x8f0   :  { %1664 = vmax.xlane.f32.xlu2 %v1663_v6  ;;  %1655 = vmax.xlane.f32.xlu1 %v1654_v48 }
 0x8f1   :  { %2041 = vmatpush.msra.mxu2 %v2515_v59 }
 0x8f4   :  { %v1642_v8 = vpop.f32.mrf.mxu3 }
 0x8f5   :  { %v1643_v12 = vadd.f32 %v2667_v9, %v1642_v8 }
 0x8f7   :  { %v1666_v14 = vsel %vm80_vm0, %v1643_v12, -inf }
 0x8f8   :  { %1667 = vmax.xlane.f32.xlu1 %v1666_v14 }
 0x94b   :  { %v1647_v13 = vpop.xlane.xlu1 %1646 }
 0x94c   :  { %v1669_v15 = vsub.f32 %v1581_v39, %v1647_v13 }
 0x94e   :  { %v1677_v5 = vmul.f32 1.442695, %v1669_v15 }
 0x950   :  { %2616 = vpow2.f32 %v1677_v5 }
 0x953   :  { %v1659_v17 = vpop.xlane.xlu2 %1658  ;;  %v1650_v19 = vpop.xlane.xlu1 %1649 }
 0x954   :  { %v1673_v20 = vsub.f32 %v1634_v46, %v1659_v17  ;;  %v1670_v2 = vsub.f32 %v1584_v44, %v1650_v19 }
 0x956   :  { %v2617_v21 = vpop.eup %2616  ;;  %v1685_v22 = vmul.f32 1.442695, %v1673_v20  ;;  %v1679_v23 = vmul.f32 1.442695, %v1670_v2 }
 0x957   :  { %v1693_v18 = vsel %vm80_vm0, %v2617_v21, 0.0 }
 0x958   :  { %2618 = vpow2.f32 %v1685_v22  ;;  %1694 = vadd.xlane.f32.xlu2 %v1693_v18 }
 0x959   :  { %2620 = vpow2.f32 %v1679_v23 }
 0x95b   :  { %v1662_v25 = vpop.xlane.xlu2 %1661  ;;  %v1653_v26 = vpop.xlane.xlu1 %1652 }
 0x95c   :  { %v1674_v27 = vsub.f32 %v1637_v53, %v1662_v25  ;;  %v1671_v28 = vsub.f32 %v1587_v52, %v1653_v26 }
 0x95e   :  { %v2619_v3 = vpop.eup %2618  ;;  %v1687_v29 = vmul.f32 1.442695, %v1674_v27  ;;  %v1681_v24 = vmul.f32 1.442695, %v1671_v28 }
 0x95f   :  { %v2621_v30 = vpop.eup %2620  ;;  %v1705_v31 = vsel %vm80_vm0, %v2619_v3, 0.0 }
 0x960   :  { %2622 = vpow2.f32 %v1687_v29  ;;  %1706 = vadd.xlane.f32.xlu1 %v1705_v31  ;;  %v1696_v32 = vsel %vm80_vm0, %v2621_v30, 0.0 }
 0x961   :  { %2624 = vpow2.f32 %v1681_v24  ;;  %1697 = vadd.xlane.f32.xlu0 %v1696_v32 }
 0x963   :  { %v1665_v33 = vpop.xlane.xlu2 %1664  ;;  %v1656_v34 = vpop.xlane.xlu1 %1655 }
 0x964   :  { %v1675_v35 = vsub.f32 %v1640_v4, %v1665_v33  ;;  %v1672_v63 = vsub.f32 %v1590_v60, %v1656_v34 }
 0x966   :  { %v2623_v36 = vpop.eup %2622  ;;  %v1689_v37 = vmul.f32 1.442695, %v1675_v35  ;;  %v1683_v16 = vmul.f32 1.442695, %v1672_v63  ;;  %v2556_v35 = vld [vmem:[%s3644_s9 + $0x1] ss:$0 sm:$0xff] }
 0x967   :  { %v2625_v39 = vpop.eup %2624  ;;  %v1708_v40 = vsel %vm80_vm0, %v2623_v36, 0.0 }
 0x968   :  { %2626 = vpow2.f32 %v1689_v37  ;;  %v1699_v0 = vsel %vm80_vm0, %v2625_v39, 0.0 }
 0x969   :  { %2628 = vpow2.f32 %v1683_v16  ;;  %1709 = vadd.xlane.f32.xlu0 %v1708_v40  ;;  %1700 = vadd.xlane.f32.xlu2 %v1699_v0 }
 0x96b   :  { %v1668_v42 = vpop.xlane.xlu1 %1667 }
 0x96c   :  { %v1676_v43 = vsub.f32 %v1643_v12, %v1668_v42 }
 0x96e   :  { %v2627_v44 = vpop.eup %2626  ;;  %v1691_v45 = vmul.f32 1.442695, %v1676_v43 }
 0x96f   :  { %v2629_v46 = vpop.eup %2628  ;;  %v1711_v47 = vsel %vm80_vm0, %v2627_v44, 0.0 }
 0x970   :  { %2630 = vpow2.f32 %v1691_v45  ;;  %v1702_v11 = vsel %vm80_vm0, %v2629_v46, 0.0 }
 0x971   :  { %1712 = vadd.xlane.f32.xlu2 %v1711_v47  ;;  %1703 = vadd.xlane.f32.xlu1 %v1702_v11 }
 0x976   :  { %v2631_v49 = vpop.eup %2630 }
 0x977   :  { %v1714_v50 = vsel %vm80_vm0, %v2631_v49, 0.0 }
 0x978   :  { %1715 = vadd.xlane.f32.xlu0 %v1714_v50 }
 0x9cb   :  { %v1695_v51 = vpop.xlane.xlu2 %1694 }
 0x9cc   :  { %2632 = vrcp.f32 %v1695_v51 }
 0x9d2   :  { %v2633_v52 = vpop.eup %2632 }
 0x9d3   :  { %v1725_v1 = vmul.f32 %v2633_v52, %v2617_v21  ;;  %v1707_v53 = vpop.xlane.xlu1 %1706 }
 0x9d4   :  { %v1698_v54 = vpop.xlane.xlu0 %1697  ;;  %2634 = vrcp.f32 %v1707_v53 }
 0x9d5   :  { %2636 = vrcp.f32 %v1698_v54  ;;  %2490 = vmatmul.msk.f32.vlgmr.msrb.gmra.mxu0 %vm80_vm0, %v1725_v1 }
 0x9da   :  { %v2635_v60 = vpop.eup %2634 }
 0x9db   :  { %v2637_v61 = vpop.eup %2636  ;;  %v1729_v4 = vmul.f32 %v2635_v60, %v2619_v3  ;;  %v2514_v60 = vld [vmem:[%s3647_s12 + $0x28] sm:$0xff] }
 0x9dc   :  { %v1710_v6 = vpop.xlane.xlu0 %1709  ;;  %v1701_v48 = vpop.xlane.xlu2 %1700  ;;  %v1726_v8 = vmul.f32 %v2637_v61, %v2621_v30  ;;  %2042 = vmatpush.msra.mxu2 %v2514_v60  ;;  %v2513_v61 = vld [vmem:[%s3647_s12 + $0x20] sm:$0xff] }
 0x9dd   :  { %2638 = vrcp.f32 %v1710_v6  ;;  %2494 = vmatmul.msk.f32.vlgmr.msra.gmra.mxu1 %vm80_vm0, %v1729_v4 }
 0x9de   :  { %2640 = vrcp.f32 %v1701_v48  ;;  %2491 = vmatmul.msk.f32.gmra.mxu0 %vm80_vm0, %v1726_v8  ;;  %2043 = vmatpush.msra.mxu2 %v2513_v61  ;;  %v2523_v61 = vld [vmem:[%s3649_s14 + $0x48] sm:$0xff] }
 0x9e3   :  { %v2639_v9 = vpop.eup %2638 }
 0x9e4   :  { %v2641_v12 = vpop.eup %2640  ;;  %v1713_v14 = vpop.xlane.xlu2 %1712  ;;  %v1730_v15 = vmul.f32 %v2639_v9, %v2623_v36 }
 0x9e5   :  { %v1704_v13 = vpop.xlane.xlu1 %1703  ;;  %2642 = vrcp.f32 %v1713_v14  ;;  %v1727_v5 = vmul.f32 %v2641_v12, %v2625_v39 }
 0x9e6   :  { %2644 = vrcp.f32 %v1704_v13  ;;  %2495 = vmatmul.msk.f32.gmra.mxu1 %vm80_vm0, %v1730_v15 }
 0x9e7   :  { %2492 = vmatmul.msk.f32.gmra.mxu0 %vm80_vm0, %v1727_v5 }
 0x9eb   :  { %v2643_v17 = vpop.eup %2642  ;;  %v1716_v19 = vpop.xlane.xlu0 %1715 }
 0x9ec   :  { %v2645_v20 = vpop.eup %2644  ;;  %2646 = vrcp.f32 %v1716_v19  ;;  %v1731_v2 = vmul.f32 %v2643_v17, %v2627_v44 }
 0x9ed   :  { %v1728_v21 = vmul.f32 %v2645_v20, %v2629_v46 }
 0x9ee   :  { %2496 = vmatmul.msk.f32.gmra.mxu1 %vm80_vm0, %v1731_v2 }
 0x9ef   :  { %2493 = vmatmul.msk.f32.gmra.mxu0 %vm80_vm0, %v1728_v21  ;;  %v2557_v21 = vld [vmem:[%s3645_s10 + $0x1] ss:$0 sm:$0xff] }
 0x9f2   :  { %v2647_v22 = vpop.eup %2646 }
 0x9f3   :  { %v1732_v23 = vmul.f32 %v2647_v22, %v2631_v49 }
 0x9f6   :  { %2497 = vmatmul.msk.f32.gmra.mxu1 %vm80_vm0, %v1732_v23 }
 0xa52   :  { %v1762_v18 = vpop.f32.mrf.mxu0 }
 0xa53   :  { %2502 = vmatmul.msk.f32.vlgmr.msrb.gmra.mxu3 %vm481_vm8, %v1762_v18  ;;  %v2558_v18 = vld [vmem:[%s3646_s11 + $0x1] ss:$0 sm:$0xff] }
 0xa5a   :  { %v1803_v25 = vpop.f32.mrf.mxu1 }
 0xa5b   :  { %v1765_v26 = vpop.f32.mrf.mxu0  ;;  %2503 = vmatmul.msk.f32.gmra.mxu3 %vm481_vm8, %v1803_v25 }
 0xa5c   :  { %2500 = vmatmul.msk.f32.vlgmr.msrb.gmra.mxu2 %vm481_vm8, %v1765_v26 }
 0xa63   :  { %v1806_v27 = vpop.f32.mrf.mxu1 }
 0xa64   :  { %v1768_v28 = vpop.f32.mrf.mxu0  ;;  %2501 = vmatmul.msk.f32.gmra.mxu2 %vm481_vm8, %v1806_v27 }
 0xa65   :  { %2505 = vmatmul.msk.f32.vlgmr.msra.gmra.mxu0 %vm481_vm8, %v1768_v28 }
 0xa6b   :  { %v1809_v3 = vpop.f32.mrf.mxu1 }
 0xa6c   :  { %v1771_v29 = vpop.f32.mrf.mxu0 }
 0xa6d   :  { %2506 = vmatmul.msk.f32.gmra.mxu0 %vm481_vm8, %v1809_v3  ;;  %2508 = vmatmul.msk.f32.vlgmr.msrb.gmra.mxu1 %vm481_vm8, %v1771_v29 }
 0xa73   :  { %v1812_v24 = vpop.f32.mrf.mxu1 }
 0xa75   :  { %2509 = vmatmul.msk.f32.gmra.mxu1 %vm481_vm8, %v1812_v24 }
 0xad6   :  { %v1871_v31 = vpop.f32.mrf.mxu3 }
 0xade   :  { %v1874_v16 = vpop.f32.mrf.mxu3 }
 0xadf   :  { %v1842_v30 = vpop.f32.mrf.mxu2 }
 0xae0   :  { %v1872_v33 = vadd.f32 %v1871_v31, %v1842_v30 }
 0xae2   :  { %v1902_v32 = vpop.f32.mrf.mxu0 }
 0xae3   :  { %v1908_v34 = vadd.f32 %v1902_v32, %v1872_v33  ;;  %v2559_v33 = vld [vmem:[%s3648_s13 + $0x1] ss:$0 sm:$0xff] }
 0xae7   :  { %v1845_v63 = vpop.f32.mrf.mxu2 }
 0xae8   :  { %v1875_v39 = vadd.f32 %v1874_v16, %v1845_v63 }
 0xaea   :  { %v1935_v36 = vpop.f32.mrf.mxu1  ;;  %v1905_v0 = vpop.f32.mrf.mxu0 }
 0xaeb   :  { %v1941_v37 = vadd.f32 %v1935_v36, %v1908_v34  ;;  %v1909_v43 = vadd.f32 %v1905_v0, %v1875_v39  ;;  %v2529_v39 = vld [vmem:[%s3649_s14 + $0x78] sm:$0xff] }
 0xaec   :  { %2162 = vmatpush.msra.mxu3 %v2529_v39 }
 0xaed   :  { %v1948_v40 = vadd.f32 %v2556_v35, %v1941_v37 }
 0xaef   :  { %v1950_v42 = vmul.f32 %v1948_v40, %v3120_v57 }
 0xaf1   :  { %v3509_v44 = vadd.f32 %v1950_v42, %v3219_v38 }
 0xaf2   :  { %v1938_v45 = vpop.f32.mrf.mxu1 }
 0xaf3   :  { %v1942_v46 = vadd.f32 %v1938_v45, %v1909_v43  ;;  %v1958_v47 = vsel %vm80_vm0, %v3509_v44, 0.0  ;;  %v2528_v43 = vld [vmem:[%s3649_s14 + $0x70] sm:$0xff] }
 0xaf4   :  { %1959 = vadd.xlane.f32.xlu1 %v1958_v47  ;;  %2163 = vmatpush.msra.mxu3 %v2528_v43 }
 0xaf5   :  { %v1949_v11 = vadd.f32 %v2556_v35, %v1942_v46 }
 0xaf7   :  { %v1951_v49 = vmul.f32 %v1949_v11, %v3128_v7  ;;  %v2527_v11 = vld [vmem:[%s3649_s14 + $0x68] sm:$0xff] }
 0xaf8   :  { %2164 = vmatpush.msra.mxu3 %v2527_v11 }
 0xaf9   :  { %v3515_v50 = vadd.f32 %v1951_v49, %v3224_v41 }
 0xafb   :  { %v1961_v51 = vsel %vm80_vm0, %v3515_v50, 0.0 }
 0xafc   :  { %1962 = vadd.xlane.f32.xlu2 %v1961_v51 }
 0xb67   :  { %v1960_v57 = vpop.xlane.xlu1 %1959 }
 0xb68   :  { %v1964_v38 = vmul.f32 %v1960_v57, %v2819_v10 }
 0xb6a   :  { %v1966_v52 = vsub.f32 %v3509_v44, %v1964_v38  ;;  %v2526_v38 = vld [vmem:[%s3649_s14 + $0x60] sm:$0xff] }
 0xb6b   :  { %2165 = vmatpush.msra.mxu3 %v2526_v38 }
 0xb6c   :  { %v1968_v1 = vmul.f32 %v1966_v52, %v1966_v52 }
 0xb6e   :  { %v1970_v53 = vsel %vm80_vm0, %v1968_v1, 0.0 }
 0xb6f   :  { %1971 = vadd.xlane.f32.xlu0 %v1970_v53  ;;  %v1963_v54 = vpop.xlane.xlu2 %1962  ;;  %v2525_v53 = vld [vmem:[%s3649_s14 + $0x58] sm:$0xff] }
 0xb70   :  { %v1965_v55 = vmul.f32 %v1963_v54, %v2819_v10  ;;  %2166 = vmatpush.msra.mxu3 %v2525_v53 }
 0xb72   :  { %v1967_v7 = vsub.f32 %v3515_v50, %v1965_v55 }
 0xb74   :  { %v1969_v41 = vmul.f32 %v1967_v7, %v1967_v7 }
 0xb76   :  { %v1973_v56 = vsel %vm80_vm0, %v1969_v41, 0.0  ;;  %v2524_v41 = vld [vmem:[%s3649_s14 + $0x50] sm:$0xff] }
 0xb77   :  { %1974 = vadd.xlane.f32.xlu1 %v1973_v56  ;;  %2167 = vmatpush.msra.mxu3 %v2524_v41 }
 0xb79   :  { %2168 = vmatpush.msra.mxu3 %v2523_v61 }
 0xbe2   :  { %v1972_v4 = vpop.xlane.xlu0 %1971 }
 0xbe3   :  { %v1976_v6 = vmul.f32 %v1972_v4, %v2819_v10 }
 0xbe5   :  { %v1978_v48 = vadd.f32 1e-05, %v1976_v6 }
 0xbe7   :  { %2648 = vrsqrt.f32 %v1978_v48  ;;  %vm1986_vm2 = vweird.f32 %v1978_v48 }
 0xbea   :  { %v1975_v8 = vpop.xlane.xlu1 %1974 }
 0xbeb   :  { %v1977_v9 = vmul.f32 %v1975_v8, %v2819_v10  ;;  %v2522_v8 = vld [vmem:[%s3649_s14 + $0x40] sm:$0xff] }
 0xbec   :  { %2169 = vmatpush.msra.mxu3 %v2522_v8 }
 0xbed   :  { %v2649_v12 = vpop.eup %2648  ;;  %v1979_v14 = vadd.f32 1e-05, %v1977_v9 }
 0xbee   :  { %v1981_v13 = vmul.f32 %v2649_v12, %v1978_v48  ;;  %vm1987_vm8 = vweird.f32 %v2649_v12 }
 0xbef   :  { %2650 = vrsqrt.f32 %v1979_v14  ;;  %vm1988_vm3 = vmor %vm1986_vm2, %vm1987_vm8  ;;  %vm1996_vm5 = vweird.f32 %v1979_v14 }
 0xbf0   :  { %v1982_v15 = vmul.f32 %v2649_v12, %v1981_v13 }
 0xbf2   :  { %v1983_v5 = vmul.f32 0.5, %v1982_v15 }
 0xbf4   :  { %v1984_v17 = vsub.f32 1.5, %v1983_v5 }
 0xbf5   :  { %v2651_v19 = vpop.eup %2650 }
 0xbf6   :  { %v1985_v20 = vmul.f32 %v2649_v12, %v1984_v17  ;;  %v1991_v2 = vmul.f32 %v2651_v19, %v1979_v14  ;;  %vm1997_vm4 = vweird.f32 %v2651_v19 }
 0xbf7   :  { %vm1998_vm6 = vmor %vm1996_vm5, %vm1997_vm4 }
 0xbf8   :  { %v1989_v22 = vsel %vm1988_vm3, %v2649_v12, %v1985_v20  ;;  %v1992_v23 = vmul.f32 %v2651_v19, %v1991_v2 }
 0xbf9   :  { %v2000_v25 = vmul.f32 %v1989_v22, %v1966_v52 }
 0xbfa   :  { %v1993_v26 = vmul.f32 0.5, %v1992_v23 }
 0xbfb   :  { %v2005_v27 = vmul.f32 %v2557_v21, %v2000_v25 }
 0xbfc   :  { %v1994_v28 = vsub.f32 1.5, %v1993_v26 }
 0xbfd   :  { %v2010_v3 = vadd.f32 %v2558_v18, %v2005_v27 }
 0xbfe   :  { %v1995_v29 = vmul.f32 %v2651_v19, %v1994_v28 }
 0xbff   :  { %2518 = vmatmul.msk.f32.vlgmr.msra.gmra.mxu2 %vm80_vm0, %v2010_v3 }
 0xc00   :  { %v1999_v24 = vsel %vm1998_vm6, %v2651_v19, %v1995_v29 }
 0xc01   :  { %v2001_v30 = vmul.f32 %v1999_v24, %v1967_v7 }
 0xc03   :  { %v2006_v31 = vmul.f32 %v2557_v21, %v2001_v30 }
 0xc05   :  { %v2011_v32 = vadd.f32 %v2558_v18, %v2006_v31 }
 0xc07   :  { %2519 = vmatmul.msk.f32.gmra.mxu2 %vm80_vm0, %v2011_v32 }
 0xc82   :  { %v2045_v34 = vpop.f32.mrf.mxu2 }
 0xc83   :  { %v3550_v35 = vadd.f32 %v2559_v33, %v2045_v34 }
 0xc85   :  { %v3554_v63 = vmul.f32 %v3550_v35, %v3167_v62 }
 0xc87   :  { %v2055_v36 = vmul.f32 %v3554_v63, %v3554_v63 }
 0xc89   :  { %v2056_v37 = vmin.f32 %v2055_v36, 16.0 }
 0xc8a   :  { %v2048_v16 = vpop.f32.mrf.mxu2 }
 0xc8b   :  { %v2057_v40 = vmul.f32 2.1237322e-06, %v2056_v37  ;;  %v2068_v0 = vmul.f32 3.8918573e-05, %v2056_v37  ;;  %v3561_v42 = vadd.f32 %v2559_v33, %v2048_v16 }
 0xc8d   :  { %v2058_v45 = vadd.f32 0.00028619796, %v2057_v40  ;;  %v2069_v46 = vadd.f32 0.001143296, %v2068_v0  ;;  %v3568_v47 = vmul.f32 %v3561_v42, %v3167_v62 }
 0xc8f   :  { %v2059_v49 = vmul.f32 %v2058_v45, %v2056_v37  ;;  %v2070_v51 = vmul.f32 %v2069_v46, %v2056_v37  ;;  %v2095_v57 = vmul.f32 %v3568_v47, %v3568_v47 }
 0xc91   :  { %v2071_v52 = vadd.f32 0.014752088, %v2070_v51  ;;  %v2096_v1 = vmin.f32 %v2095_v57, 16.0  ;;  %v2060_v62 = vadd.f32 0.0036580483, %v2059_v49 }
 0xc93   :  { %v2072_v54 = vmul.f32 %v2071_v52, %v2056_v37  ;;  %v2097_v55 = vmul.f32 2.1237322e-06, %v2096_v1  ;;  %v2108_v7 = vmul.f32 3.8918573e-05, %v2096_v1  ;;  %v2061_v59 = vmul.f32 %v2060_v62, %v2056_v37 }
 0xc94   :  { %v2051_v62 = vmul.f32 0.5, %v3550_v35  ;;  %v2560_v35 = vld [vmem:[%s3650_s15 + $0x1] ss:$0 sm:$0xff] }
 0xc95   :  { %v2073_v56 = vadd.f32 0.112945676, %v2072_v54  ;;  %v2098_v58 = vadd.f32 0.00028619796, %v2097_v55  ;;  %v2109_v60 = vadd.f32 0.001143296, %v2108_v7 }
 0xc96   :  { %v2062_v12 = vadd.f32 0.05243302, %v2061_v59  ;;  %v2052_v59 = vmul.f32 0.5, %v3561_v42 }
 0xc97   :  { %v2074_v4 = vmul.f32 %v2073_v56, %v2056_v37  ;;  %v2099_v6 = vmul.f32 %v2098_v58, %v2096_v1  ;;  %v2110_v48 = vmul.f32 %v2109_v60, %v2096_v1 }
 0xc98   :  { %v2063_v19 = vmul.f32 %v2062_v12, %v2056_v37 }
 0xc99   :  { %v2075_v9 = vadd.f32 0.4994258, %v2074_v4  ;;  %v2111_v14 = vadd.f32 0.014752088, %v2110_v48  ;;  %v2100_v15 = vadd.f32 0.0036580483, %v2099_v6 }
 0xc9a   :  { %v2064_v22 = vadd.f32 0.18741608, %v2063_v19 }
 0xc9b   :  { %v2076_v13 = vmul.f32 %v2075_v9, %v2056_v37  ;;  %v2112_v5 = vmul.f32 %v2111_v14, %v2096_v1  ;;  %v2101_v2 = vmul.f32 %v2100_v15, %v2096_v1 }
 0xc9c   :  { %v2065_v27 = vmul.f32 %v2064_v22, %v2056_v37  ;;  %v2244_v22 = vld [vmem:[%s3653_s18 + $0x10] sm:$0xff] }
 0xc9d   :  { %v2077_v17 = vadd.f32 1.0, %v2076_v13  ;;  %v2113_v20 = vadd.f32 0.112945676, %v2112_v5  ;;  %v2102_v18 = vadd.f32 0.05243302, %v2101_v2 }
 0xc9e   :  { %v2066_v31 = vadd.f32 1.1283791, %v2065_v27 }
 0xc9f   :  { %2652 = vrcp.f32 %v2077_v17  ;;  %v2114_v21 = vmul.f32 %v2113_v20, %v2096_v1  ;;  %v2103_v29 = vmul.f32 %v2102_v18, %v2096_v1  ;;  %v2089_v30 = vand.u32 2147483648, %v2077_v17  ;;  %v2242_v18 = vld [vmem:[%s3653_s18] sm:$0xff] }
 0xca0   :  { %v2087_v33 = vand.u32 2147483647, %v2077_v17  ;;  %vm2083_vm10 = vweird.f32 %v2077_v17  ;;  %v2067_v40 = vmul.f32 %v2066_v31, %v3554_v63 }
 0xca1   :  { %v2115_v23 = vadd.f32 0.4994258, %v2114_v21  ;;  %v2104_v34 = vadd.f32 0.18741608, %v2103_v29  ;;  %v2090_v16 = vor.u32 1.1754944e-38, %v2089_v30 }
 0xca2   :  { %vm2088_vm12 = vcmp.eq.f32.partialorder %v2087_v33, 8.507059e+37 }
 0xca3   :  { %v2116_v25 = vmul.f32 %v2115_v23, %v2096_v1  ;;  %v2105_v43 = vmul.f32 %v2104_v34, %v2096_v1  ;;  %v2243_v23 = vld [vmem:[%s3653_s18 + $0x8] sm:$0xff] }
 0xca5   :  { %v2653_v26 = vpop.eup %2652  ;;  %v2117_v3 = vadd.f32 1.0, %v2116_v25  ;;  %v2106_v57 = vadd.f32 1.1283791, %v2105_v43 }
 0xca6   :  { %v2079_v28 = vmul.f32 %v2653_v26, %v2077_v17  ;;  %vm2084_vm9 = vweird.f32 %v2653_v26 }
 0xca7   :  { %2654 = vrcp.f32 %v2117_v3  ;;  %vm2085_vm11 = vmor %vm2083_vm10, %vm2084_vm9  ;;  %v2129_v51 = vand.u32 2147483648, %v2117_v3  ;;  %v2127_v52 = vand.u32 2147483647, %v2117_v3  ;;  %vm2123_vm14 = vweird.f32 %v2117_v3 }
 0xca8   :  { %v2080_v24 = vsub.f32 1.0, %v2079_v28  ;;  %v2107_v7 = vmul.f32 %v2106_v57, %v3568_v47 }
 0xca9   :  { %v2130_v63 = vor.u32 1.1754944e-38, %v2129_v51  ;;  %vm2128_vm1 = vcmp.eq.f32.partialorder %v2127_v52, 8.507059e+37 }
 0xcaa   :  { %v2081_v32 = vmul.f32 %v2653_v26, %v2080_v24 }
 0xcac   :  { %v2082_v36 = vadd.f32 %v2653_v26, %v2081_v32 }
 0xcad   :  { %v2655_v39 = vpop.eup %2654 }
 0xcae   :  { %v2086_v0 = vsel %vm2085_vm11, %v2653_v26, %v2082_v36  ;;  %v2119_v45 = vmul.f32 %v2655_v39, %v2117_v3  ;;  %vm2124_vm13 = vweird.f32 %v2655_v39 }
 0xcaf   :  { %v2091_v37 = vsel %vm2088_vm12, %v2090_v16, %v2086_v0  ;;  %vm2125_vm15 = vmor %vm2123_vm14, %vm2124_vm13  ;;  %v2561_v16 = vld [vmem:[%s3651_s16] ss:$0 sm:$0xff] }
 0xcb0   :  { %v2092_v46 = vmul.f32 %v2091_v37, %v2067_v40  ;;  %v2120_v11 = vsub.f32 1.0, %v2119_v45 }
 0xcb2   :  { %v2520_v49 = vclamps-f32 %v2092_v46, 1.0  ;;  %v2121_v38 = vmul.f32 %v2655_v39, %v2120_v11 }
 0xcb4   :  { %v2135_v53 = vadd.f32 1.0, %v2520_v49  ;;  %v2122_v54 = vadd.f32 %v2655_v39, %v2121_v38 }
 0xcb6   :  { %v2137_v55 = vmul.f32 %v2135_v53, %v2051_v62  ;;  %v2126_v1 = vsel %vm2125_vm15, %v2655_v39, %v2122_v54  ;;  %v2563_v62 = vld [vmem:[%s3654_s19] ss:$0 sm:$0xff] }
 0xcb7   :  { %v2131_v41 = vsel %vm2128_vm1, %v2130_v63, %v2126_v1 }
 0xcb8   :  { %2530 = vmatmul.msk.f32.vlgmr.msra.gmra.mxu3 %vm1101_vm7, %v2137_v55  ;;  %v2132_v56 = vmul.f32 %v2131_v41, %v2107_v7 }
 0xcba   :  { %v2521_v58 = vclamps-f32 %v2132_v56, 1.0 }
 0xcbc   :  { %v2136_v60 = vadd.f32 1.0, %v2521_v58 }
 0xcbe   :  { %v2138_v61 = vmul.f32 %v2136_v60, %v2052_v59 }
 0xcc0   :  { %2531 = vmatmul.msk.f32.gmra.mxu3 %vm1101_vm7, %v2138_v61 }
 0xd3b   :  { %v2171_v4 = vpop.f32.mrf.mxu3 }
 0xd3c   :  { %v2177_v47 = vadd.f32 %v2171_v4, %v3509_v44 }
 0xd3e   :  { %v2184_v6 = vadd.f32 %v2560_v35, %v2177_v47 }
 0xd40   :  { %v2188_v48 = vsel %vm80_vm0, %v2184_v6, 0.0 }
 0xd41   :  { %2189 = vadd.xlane.f32.xlu2 %v2188_v48 }
 0xd43   :  { %v2174_v8 = vpop.f32.mrf.mxu3 }
 0xd44   :  { %v2178_v9 = vadd.f32 %v2174_v8, %v3515_v50  ;;  %v2245_v50 = vld [vmem:[%s3653_s18 + $0x18] sm:$0xff] }
 0xd45   :  { %2268 = vmatpush.msrb.mxu0 %v2245_v50 }
 0xd46   :  { %v2185_v12 = vadd.f32 %v2560_v35, %v2178_v9 }
 0xd47   :  { %2269 = vmatpush.msrb.mxu0 %v2244_v22 }
 0xd48   :  { %v2191_v42 = vsel %vm80_vm0, %v2185_v12, 0.0 }
 0xd49   :  { %2192 = vadd.xlane.f32.xlu0 %v2191_v42  ;;  %2270 = vmatpush.msrb.mxu0 %v2243_v23 }
 0xd4b   :  { %2271 = vmatpush.msrb.mxu0 %v2242_v18 }
 0xdb4   :  { %v2190_v14 = vpop.xlane.xlu2 %2189 }
 0xdb5   :  { %v2194_v13 = vmul.f32 %v2190_v14, %v2819_v10 }
 0xdb7   :  { %v2196_v15 = vsub.f32 %v2184_v6, %v2194_v13 }
 0xdb9   :  { %v2198_v5 = vmul.f32 %v2196_v15, %v2196_v15 }
 0xdbb   :  { %v2200_v17 = vsel %vm80_vm0, %v2198_v5, 0.0 }
 0xdbc   :  { %2201 = vadd.xlane.f32.xlu1 %v2200_v17  ;;  %v2193_v44 = vpop.xlane.xlu0 %2192 }
 0xdbd   :  { %v2195_v19 = vmul.f32 %v2193_v44, %v2819_v10 }
 0xdbf   :  { %v2197_v20 = vsub.f32 %v2185_v12, %v2195_v19 }
 0xdc1   :  { %v2199_v2 = vmul.f32 %v2197_v20, %v2197_v20 }
 0xdc3   :  { %v2203_v21 = vsel %vm80_vm0, %v2199_v2, 0.0 }
 0xdc4   :  { %2204 = vadd.xlane.f32.xlu2 %v2203_v21 }
 0xe2f   :  { %v2202_v25 = vpop.xlane.xlu1 %2201 }
 0xe30   :  { %v2206_v26 = vmul.f32 %v2202_v25, %v2819_v10 }
 0xe32   :  { %v2208_v27 = vadd.f32 1e-05, %v2206_v26 }
 0xe34   :  { %2656 = vrsqrt.f32 %v2208_v27  ;;  %vm2216_vm8 = vweird.f32 %v2208_v27 }
 0xe37   :  { %v2205_v28 = vpop.xlane.xlu2 %2204 }
 0xe38   :  { %v2207_v3 = vmul.f32 %v2205_v28, %v2819_v10  ;;  %v2562_v10 = vld [vmem:[%s3652_s17] ss:$0 sm:$0xff] }
 0xe3a   :  { %v2657_v29 = vpop.eup %2656  ;;  %v2209_v30 = vadd.f32 1e-05, %v2207_v3 }
 0xe3b   :  { %v2211_v24 = vmul.f32 %v2657_v29, %v2208_v27  ;;  %vm2217_vm7 = vweird.f32 %v2657_v29 }
 0xe3c   :  { %2658 = vrsqrt.f32 %v2209_v30  ;;  %vm2218_vm2 = vmor %vm2216_vm8, %vm2217_vm7  ;;  %vm2226_vm4 = vweird.f32 %v2209_v30 }
 0xe3d   :  { %v2212_v31 = vmul.f32 %v2657_v29, %v2211_v24 }
 0xe3f   :  { %v2213_v32 = vmul.f32 0.5, %v2212_v31 }
 0xe41   :  { %v2214_v33 = vsub.f32 1.5, %v2213_v32 }
 0xe42   :  { %v2659_v34 = vpop.eup %2658 }
 0xe43   :  { %v2215_v36 = vmul.f32 %v2657_v29, %v2214_v33  ;;  %v2221_v39 = vmul.f32 %v2659_v34, %v2209_v30  ;;  %vm2227_vm3 = vweird.f32 %v2659_v34 }
 0xe44   :  { %vm2228_vm5 = vmor %vm2226_vm4, %vm2227_vm3 }
 0xe45   :  { %v2219_v40 = vsel %vm2218_vm2, %v2657_v29, %v2215_v36  ;;  %v2222_v37 = vmul.f32 %v2659_v34, %v2221_v39 }
 0xe46   :  { %v2230_v0 = vmul.f32 %v2219_v40, %v2196_v15 }
 0xe47   :  { %v2223_v45 = vmul.f32 0.5, %v2222_v37 }
 0xe48   :  { %v2235_v43 = vmul.f32 %v2561_v16, %v2230_v0 }
 0xe49   :  { %v2224_v11 = vsub.f32 1.5, %v2223_v45 }
 0xe4a   :  { %v2240_v46 = vadd.f32 %v2562_v10, %v2235_v43 }
 0xe4b   :  { %v2225_v49 = vmul.f32 %v2659_v34, %v2224_v11 }
 0xe4c   :  { %2533 = vmatmul.msk.f32.vlgmr.msrb.gmra.mxu0 %vm80_vm0, %v2240_v46 }
 0xe4d   :  { %v2229_v51 = vsel %vm2228_vm5, %v2659_v34, %v2225_v49 }
 0xe4e   :  { %v2231_v57 = vmul.f32 %v2229_v51, %v2197_v20 }
 0xe50   :  { %v2236_v38 = vmul.f32 %v2561_v16, %v2231_v57 }
 0xe52   :  { %v2241_v52 = vadd.f32 %v2562_v10, %v2236_v38 }
 0xe54   :  { %2534 = vmatmul.msk.f32.gmra.mxu0 %vm80_vm0, %v2241_v52 }
 0xec9   :  { %v2273_v53 = vpop.f32.mrf.mxu0 }
 0xeca   :  { %v2274_v54 = vadd.f32 %v2563_v62, %v2273_v53 }
 0xecc   :  { %2279 = vst [vmem:[#allocation2] sm:$0xff] %v2274_v54 }
 0xed1   :  { %v2276_v55 = vpop.f32.mrf.mxu0 }
 0xed2   :  { %v2277_v63 = vadd.f32 %v2563_v62, %v2276_v55 }
 0xed4   :  { %2280 = vst [vmem:[#allocation2 + $0x8] sm:$0xff] %v2277_v63 }
 0xed5   :  { %2293 = dma.vmem_to_hbm [thread:$0]  %s2286_s23, 256, %s2288_s3, [#allocation3], %s2698_s8, %s2698_s8, %s2699_s25  }
 0xed6   :  { %2692 = dma.done.wait [#allocation3], 256  }
 0xed7   :  { %2693 = vsyncadd [#allocation3], 4294967040 }
 0xed8   :  { %2298 = vsyncpa [#allocation3], 1 }

</bundles_post_ra>
